<compile_context>
chip_gen: v5e
topology: v5e:2x2
jax: 0.10.0
libtpu: 0.0.40
codegen_flags: <defaults>
</compile_context>

<pallas_src>
import functools

import jax
import jax.numpy as jnp
from jax.experimental import pallas as pl
from jax.experimental.pallas import tpu as pltpu

INP_SIZE = 128   # per-modality input feature size (free parameter of the module)
DIM = 512        # block output size (fixed by layer3/layer5 shapes)
N_OUT = 7        # layer5 output size
LANE = 128       # lane-padding target for tiny tails
BATCH = 256      # demo batch (grid of 2 x bm=128 tiles -> both TCs on v7x)


def _round_up(x, m):
    return (x + m - 1) // m * m


def _cdiv(a, b):
    return -(-a // b)


def netgated_kernel(
    rgb_ref, dep_ref,            # (bm, INP) activation tiles (f32 in, cast here)
    w1g_ref, b1g_ref,            # rgb:   (INP, 640) bf16, (1, 640) f32
    w2g_ref, b2g_ref,            # depth: (INP, 640) bf16, (1, 640) f32
    w5_ref, b5_ref,              # layer5 (lane-padded): (512, 128) bf16, (1, 128) f32
    out_ref, emb_ref,            # (bm, 128) bf16, (bm, 512) bf16
):
    f32 = jnp.float32
    bf16 = jnp.bfloat16

    rgb = rgb_ref[...].astype(bf16)          # (bm, 128) cheap VPU cast
    dep = dep_ref[...].astype(bf16)

    # One fused dot per modality: columns [0:512] = block output,
    # columns [512:640] = folded-gate partial (only cols 512,513 are real).
    y1 = jnp.dot(rgb, w1g_ref[...], preferred_element_type=f32) + b1g_ref[...]
    y2 = jnp.dot(dep, w2g_ref[...], preferred_element_type=f32) + b2g_ref[...]

    x_rgb = y1[:, :DIM]                      # (bm, 512) f32
    x_dep = y2[:, :DIM]
    gates = y1[:, DIM:] + y2[:, DIM:]        # (bm, 128) f32; cols 0/1 are the gates

    # embed_x = gates[:, 0:1] * x_rgb + gates[:, 1:2] * x_depth   (f32 VPU)
    embed = gates[:, 0:1] * x_rgb + gates[:, 1:2] * x_dep
    embed16 = embed.astype(bf16)             # single (bm,512) cast, reused for store

    # layer5: Linear(512 -> 7), lane-padded to 128 output columns.
    out = jnp.dot(embed16, w5_ref[...], preferred_element_type=f32) + b5_ref[...]

    out_ref[...] = out.astype(out_ref.dtype)   # lane-dense (bm, 128) bf16 store
    emb_ref[...] = embed16                     # dominant HBM stream, bf16


def prepare_params(params):
    """One-time prep: fold layer3∘layer4 *and* W1/W2 into gate weights, pack, cast."""
    (w1, b1, w2, b2, w3, b3, w4, b4, w5, b5) = params
    f32, bf16 = jnp.float32, jnp.bfloat16

    # Fold in f32 (no nonlinearity between the blocks, layer3 and layer4).
    w34 = w3 @ w4                   # (1024, 2)
    a_rgb = w34[:DIM]               # = W3[:512] @ W4   (512, 2)
    a_dep = w34[DIM:]               # = W3[512:] @ W4   (512, 2)
    bg34 = b3 @ w4 + b4             # (1, 2)

    wg_rgb = w1 @ a_rgb             # (128, 2)
    wg_dep = w2 @ a_dep             # (128, 2)
    bg_rgb = b1 @ a_rgb + bg34      # (1, 2)  (carries the layer3/4 bias)
    bg_dep = b2 @ a_dep             # (1, 2)

    def pack(w_main, wg, b_main, bg):
        wf = jnp.zeros((w_main.shape[0], DIM + LANE), f32)
        wf = wf.at[:, :DIM].set(w_main).at[:, DIM:DIM + 2].set(wg)
        bf = jnp.zeros((1, DIM + LANE), f32)
        bf = bf.at[:, :DIM].set(b_main).at[:, DIM:DIM + 2].set(bg)
        return wf.astype(bf16), bf

    w1g, b1g = pack(w1, wg_rgb, b1, bg_rgb)
    w2g, b2g = pack(w2, wg_dep, b2, bg_dep)

    w5p = jnp.zeros((DIM, LANE), f32).at[:, :N_OUT].set(w5).astype(bf16)
    b5p = jnp.zeros((1, LANE), f32).at[:, :N_OUT].set(b5)

    return (w1g, b1g, w2g, b2g, w5p, b5p)


@functools.partial(jax.jit, static_argnames=("block_m",))
def netgated_forward(rgb, depth, kparams, block_m=1024):
    (w1g, b1g, w2g, b2g, w5p, b5p) = kparams
    B = rgb.shape[0]

    # Batch tiling: 16-row granularity (bf16 sublane packing), tiles as large
    # as block_m, but always >= 2 grid steps when B allows (v7x megacore).
    b16 = _round_up(max(B, 1), 16)
    n_tiles_min = max(2, _cdiv(b16, block_m)) if b16 >= 32 else 1
    bm = _round_up(_cdiv(b16, n_tiles_min), 16)
    b_pad = _round_up(b16, bm)
    n_m = b_pad // bm

    rgb_p, dep_p = rgb, depth
    if b_pad != B:
        pad = ((0, b_pad - B), (0, 0))
        rgb_p = jnp.pad(rgb_p, pad)     # padded rows produce bias-only garbage,
        dep_p = jnp.pad(dep_p, pad)     # sliced off below

    def act_spec(ncols):
        return pl.BlockSpec((bm, ncols), lambda i: (i, 0))

    def resident(arr):
        # Full-array block + constant index map -> DMA'd once, VMEM-resident
        # across all grid steps.
        return pl.BlockSpec(arr.shape, lambda i: (0, 0))

    out_pad, emb = pl.pallas_call(
        netgated_kernel,
        out_shape=(
            jax.ShapeDtypeStruct((b_pad, LANE), jnp.bfloat16),  # out slab (lane-padded)
            jax.ShapeDtypeStruct((b_pad, DIM), jnp.bfloat16),   # embed_x
        ),
        grid=(n_m,),
        in_specs=[
            act_spec(INP_SIZE),            # rgb tile (f32)
            act_spec(INP_SIZE),            # depth tile (f32)
            resident(w1g), resident(b1g),
            resident(w2g), resident(b2g),
            resident(w5p), resident(b5p),
        ],
        out_specs=(act_spec(LANE), act_spec(DIM)),
        compiler_params=pltpu.CompilerParams(
            dimension_semantics=("parallel",),   # shard batch tiles across TCs (v7x)
        ),
    )(rgb_p, dep_p, w1g, b1g, w2g, b2g, w5p, b5p)

    # out: slice + cast back to f32 (fused XLA op) -> matches module's .float().
    out = out_pad[:B, :N_OUT].astype(jnp.float32)
    # emb returned in bf16 (dominant HBM stream); cast downstream if f32 needed.
    return out, emb[:B, :]


def init_params(key):
    """Deterministic synthetic parameter init (weights stored [in, out], f32)."""
    ks = jax.random.split(key, 10)
    scale = 0.02

    def lin(kw, kb, fan_in, fan_out):
        w = scale * jax.random.normal(kw, (fan_in, fan_out), jnp.float32)
        b = scale * jax.random.normal(kb, (1, fan_out), jnp.float32)
        return w, b

    w1, b1 = lin(ks[0], ks[1], INP_SIZE, DIM)      # block(rgb)
    w2, b2 = lin(ks[2], ks[3], INP_SIZE, DIM)      # block(depth)
    w3, b3 = lin(ks[4], ks[5], 2 * DIM, 64)        # layer3: 1024 -> 64
    w4, b4 = lin(ks[6], ks[7], 64, 2)              # layer4: 64 -> 2
    w5, b5 = lin(ks[8], ks[9], DIM, 7)             # layer5: 512 -> 7
    return (w1, b1, w2, b2, w3, b3, w4, b4, w5, b5)


def netgated_reference(rgb, depth, params):
    """Plain-JAX f32 reference matching the PyTorch forward exactly."""
    (w1, b1, w2, b2, w3, b3, w4, b4, w5, b5) = params
    x_rgb = rgb @ w1 + b1
    x_dep = depth @ w2 + b2
    x = jnp.concatenate([x_rgb, x_dep], axis=1)
    x = x @ w3 + b3
    x = x @ w4 + b4
    embed = x[:, 0:1] * x_rgb + x[:, 1:2] * x_dep
    out = embed @ w5 + b5
    return out, embed


if __name__ == "__main__":
    key = jax.random.PRNGKey(0)
    k_rgb, k_depth, k_params = jax.random.split(key, 3)

    rgb = jax.random.normal(k_rgb, (BATCH, INP_SIZE), jnp.float32)
    depth = jax.random.normal(k_depth, (BATCH, INP_SIZE), jnp.float32)
    params = init_params(k_params)

    kparams = prepare_params(params)
    out, embed = netgated_forward(rgb, depth, kparams)
    out = jax.block_until_ready(out)
    embed = jax.block_until_ready(embed)

    ref_out, ref_embed = netgated_reference(rgb, depth, params)
    assert out.shape == (BATCH, N_OUT) and embed.shape == (BATCH, DIM)
    assert out.dtype == jnp.float32
    # bf16 weights/activations + bf16 emb/out storage with f32 accumulation
    # vs f32 reference.
    assert jnp.allclose(out, ref_out, atol=5e-3, rtol=5e-2)
    assert jnp.allclose(embed.astype(jnp.float32), ref_embed, atol=5e-3, rtol=5e-2)

    print("KERNEL_OK")
</pallas_src>

<mosaic_0001>
module attributes {stable_mosaic.version = 11 : i64} {
  func.func @netgated_kernel(%arg0: i32, %arg1: memref<128x128xf32, #tpu.memory_space<vmem>>, %arg2: memref<128x128xf32, #tpu.memory_space<vmem>>, %arg3: memref<128x640xbf16, #tpu.memory_space<vmem>>, %arg4: memref<1x640xf32, #tpu.memory_space<vmem>>, %arg5: memref<128x640xbf16, #tpu.memory_space<vmem>>, %arg6: memref<1x640xf32, #tpu.memory_space<vmem>>, %arg7: memref<512x128xbf16, #tpu.memory_space<vmem>>, %arg8: memref<1x128xf32, #tpu.memory_space<vmem>>, %arg9: memref<128x128xbf16, #tpu.memory_space<vmem>>, %arg10: memref<128x512xbf16, #tpu.memory_space<vmem>>) attributes {dimension_semantics = [#tpu.dimension_semantics<parallel>], iteration_bounds = array<i64: 2>, scalar_prefetch = 0 : i64, scratch_operands = 0 : i64, tpu.core_type = #tpu.core_type<tc>, window_params = [{transform_indices = @transform_0, window_bounds = array<i64: 128, 128>}, {transform_indices = @transform_1, window_bounds = array<i64: 128, 128>}, {pipeline_mode = #tpu.pipeline_mode<synchronous>, transform_indices = @transform_2, window_bounds = array<i64: 128, 640>}, {pipeline_mode = #tpu.pipeline_mode<synchronous>, transform_indices = @transform_3, window_bounds = array<i64: 1, 640>}, {pipeline_mode = #tpu.pipeline_mode<synchronous>, transform_indices = @transform_4, window_bounds = array<i64: 128, 640>}, {pipeline_mode = #tpu.pipeline_mode<synchronous>, transform_indices = @transform_5, window_bounds = array<i64: 1, 640>}, {pipeline_mode = #tpu.pipeline_mode<synchronous>, transform_indices = @transform_6, window_bounds = array<i64: 512, 128>}, {pipeline_mode = #tpu.pipeline_mode<synchronous>, transform_indices = @transform_7, window_bounds = array<i64: 1, 128>}, {transform_indices = @transform_8, window_bounds = array<i64: 128, 128>}, {transform_indices = @transform_9, window_bounds = array<i64: 128, 512>}]} {
    %c0 = arith.constant 0 : index
    %c0_0 = arith.constant 0 : index
    %0 = vector.load %arg1[%c0, %c0_0] : memref<128x128xf32, #tpu.memory_space<vmem>>, vector<128x128xf32>
    %1 = arith.truncf %0 : vector<128x128xf32> to vector<128x128xbf16>
    %c0_1 = arith.constant 0 : index
    %c0_2 = arith.constant 0 : index
    %2 = vector.load %arg2[%c0_1, %c0_2] : memref<128x128xf32, #tpu.memory_space<vmem>>, vector<128x128xf32>
    %3 = arith.truncf %2 : vector<128x128xf32> to vector<128x128xbf16>
    %c0_3 = arith.constant 0 : index
    %c0_4 = arith.constant 0 : index
    %4 = vector.load %arg3[%c0_3, %c0_4] : memref<128x640xbf16, #tpu.memory_space<vmem>>, vector<128x640xbf16>
    %cst = arith.constant dense<0.000000e+00> : vector<128x640xf32>
    %5 = tpu.matmul %1, %4, %cst {dimension_numbers = #tpu.dot_dimension_numbers<[1], [0], [0], [1], [0, 0, 1, 1], [], []>} : vector<128x128xbf16>, vector<128x640xbf16>, vector<128x640xf32> -> vector<128x640xf32>
    %c0_5 = arith.constant 0 : index
    %c0_6 = arith.constant 0 : index
    %6 = vector.load %arg4[%c0_5, %c0_6] : memref<1x640xf32, #tpu.memory_space<vmem>>, vector<1x640xf32>
    %7 = vector.broadcast %6 : vector<1x640xf32> to vector<128x640xf32>
    %8 = arith.addf %5, %7 : vector<128x640xf32>
    %c0_7 = arith.constant 0 : index
    %c0_8 = arith.constant 0 : index
    %9 = vector.load %arg5[%c0_7, %c0_8] : memref<128x640xbf16, #tpu.memory_space<vmem>>, vector<128x640xbf16>
    %cst_9 = arith.constant dense<0.000000e+00> : vector<128x640xf32>
    %10 = tpu.matmul %3, %9, %cst_9 {dimension_numbers = #tpu.dot_dimension_numbers<[1], [0], [0], [1], [0, 0, 1, 1], [], []>} : vector<128x128xbf16>, vector<128x640xbf16>, vector<128x640xf32> -> vector<128x640xf32>
    %c0_10 = arith.constant 0 : index
    %c0_11 = arith.constant 0 : index
    %11 = vector.load %arg6[%c0_10, %c0_11] : memref<1x640xf32, #tpu.memory_space<vmem>>, vector<1x640xf32>
    %12 = vector.broadcast %11 : vector<1x640xf32> to vector<128x640xf32>
    %13 = arith.addf %10, %12 : vector<128x640xf32>
    %14 = vector.extract_strided_slice %8 {offsets = [0, 0], sizes = [128, 512], strides = [1, 1]} : vector<128x640xf32> to vector<128x512xf32>
    %15 = vector.extract_strided_slice %13 {offsets = [0, 0], sizes = [128, 512], strides = [1, 1]} : vector<128x640xf32> to vector<128x512xf32>
    %16 = vector.extract_strided_slice %8 {offsets = [0, 512], sizes = [128, 128], strides = [1, 1]} : vector<128x640xf32> to vector<128x128xf32>
    %17 = vector.extract_strided_slice %13 {offsets = [0, 512], sizes = [128, 128], strides = [1, 1]} : vector<128x640xf32> to vector<128x128xf32>
    %18 = arith.addf %16, %17 : vector<128x128xf32>
    %19 = vector.extract_strided_slice %18 {offsets = [0, 0], sizes = [128, 1], strides = [1, 1]} : vector<128x128xf32> to vector<128x1xf32>
    %20 = vector.broadcast %19 : vector<128x1xf32> to vector<128x512xf32>
    %21 = arith.mulf %20, %14 : vector<128x512xf32>
    %22 = vector.extract_strided_slice %18 {offsets = [0, 1], sizes = [128, 1], strides = [1, 1]} : vector<128x128xf32> to vector<128x1xf32>
    %23 = vector.broadcast %22 : vector<128x1xf32> to vector<128x512xf32>
    %24 = arith.mulf %23, %15 : vector<128x512xf32>
    %25 = arith.addf %21, %24 : vector<128x512xf32>
    %26 = arith.truncf %25 : vector<128x512xf32> to vector<128x512xbf16>
    %c0_12 = arith.constant 0 : index
    %c0_13 = arith.constant 0 : index
    %27 = vector.load %arg7[%c0_12, %c0_13] : memref<512x128xbf16, #tpu.memory_space<vmem>>, vector<512x128xbf16>
    %cst_14 = arith.constant dense<0.000000e+00> : vector<128x128xf32>
    %28 = tpu.matmul %26, %27, %cst_14 {dimension_numbers = #tpu.dot_dimension_numbers<[1], [0], [0], [1], [0, 0, 1, 1], [], []>} : vector<128x512xbf16>, vector<512x128xbf16>, vector<128x128xf32> -> vector<128x128xf32>
    %c0_15 = arith.constant 0 : index
    %c0_16 = arith.constant 0 : index
    %29 = vector.load %arg8[%c0_15, %c0_16] : memref<1x128xf32, #tpu.memory_space<vmem>>, vector<1x128xf32>
    %30 = vector.broadcast %29 : vector<1x128xf32> to vector<128x128xf32>
    %31 = arith.addf %28, %30 : vector<128x128xf32>
    %32 = arith.truncf %31 : vector<128x128xf32> to vector<128x128xbf16>
    %c0_17 = arith.constant 0 : index
    %c0_18 = arith.constant 0 : index
    %33 = vector.load %arg9[%c0_17, %c0_18] : memref<128x128xbf16, #tpu.memory_space<vmem>>, vector<128x128xbf16>
    tpu.vector_store %arg9[%c0_17, %c0_18], %32 {strides = array<i32>} : memref<128x128xbf16, #tpu.memory_space<vmem>>, vector<128x128xbf16>,
    %c0_19 = arith.constant 0 : index
    %c0_20 = arith.constant 0 : index
    %34 = vector.load %arg10[%c0_19, %c0_20] : memref<128x512xbf16, #tpu.memory_space<vmem>>, vector<128x512xbf16>
    tpu.vector_store %arg10[%c0_19, %c0_20], %26 {strides = array<i32>} : memref<128x512xbf16, #tpu.memory_space<vmem>>, vector<128x512xbf16>,
    return
  }
  func.func @transform_0(%arg0: i32) -> (i32, i32) {
    %c0_i32 = arith.constant 0 : i32
    %c0_i32_0 = arith.constant 0 : i32
    return %arg0, %c0_i32 : i32, i32
  }
  func.func @transform_1(%arg0: i32) -> (i32, i32) {
    %c0_i32 = arith.constant 0 : i32
    %c0_i32_0 = arith.constant 0 : i32
    return %arg0, %c0_i32 : i32, i32
  }
  func.func @transform_2(%arg0: i32) -> (i32, i32) {
    %c0_i32 = arith.constant 0 : i32
    %c0_i32_0 = arith.constant 0 : i32
    %c0_i32_1 = arith.constant 0 : i32
    return %c0_i32, %c0_i32_0 : i32, i32
  }
  func.func @transform_3(%arg0: i32) -> (i32, i32) {
    %c0_i32 = arith.constant 0 : i32
    %c0_i32_0 = arith.constant 0 : i32
    %c0_i32_1 = arith.constant 0 : i32
    return %c0_i32, %c0_i32_0 : i32, i32
  }
  func.func @transform_4(%arg0: i32) -> (i32, i32) {
    %c0_i32 = arith.constant 0 : i32
    %c0_i32_0 = arith.constant 0 : i32
    %c0_i32_1 = arith.constant 0 : i32
    return %c0_i32, %c0_i32_0 : i32, i32
  }
  func.func @transform_5(%arg0: i32) -> (i32, i32) {
    %c0_i32 = arith.constant 0 : i32
    %c0_i32_0 = arith.constant 0 : i32
    %c0_i32_1 = arith.constant 0 : i32
    return %c0_i32, %c0_i32_0 : i32, i32
  }
  func.func @transform_6(%arg0: i32) -> (i32, i32) {
    %c0_i32 = arith.constant 0 : i32
    %c0_i32_0 = arith.constant 0 : i32
    %c0_i32_1 = arith.constant 0 : i32
    return %c0_i32, %c0_i32_0 : i32, i32
  }
  func.func @transform_7(%arg0: i32) -> (i32, i32) {
    %c0_i32 = arith.constant 0 : i32
    %c0_i32_0 = arith.constant 0 : i32
    %c0_i32_1 = arith.constant 0 : i32
    return %c0_i32, %c0_i32_0 : i32, i32
  }
  func.func @transform_8(%arg0: i32) -> (i32, i32) {
    %c0_i32 = arith.constant 0 : i32
    %c0_i32_0 = arith.constant 0 : i32
    return %arg0, %c0_i32 : i32, i32
  }
  func.func @transform_9(%arg0: i32) -> (i32, i32) {
    %c0_i32 = arith.constant 0 : i32
    %c0_i32_0 = arith.constant 0 : i32
    return %arg0, %c0_i32 : i32, i32
  }
}

</mosaic_0001>

<bundles_post_ra>
// kernel: netgated_forward.1
= control target key start
LH: loop header
LB: loop body
LE: loop exit
PB: predicated region body
PF: predicated region fallthrough
CT: control target
= control target key end

     0   :  { %s5194_s0 = inlined_call_operand.hbm [shape: f32[256,128], index: 0, kind: input, shape index: {}]   ;;  %s5195_s1 = inlined_call_operand.hbm [shape: f32[256,128], index: 1, kind: input, shape index: {}]   ;;  %s5196_s2 = inlined_call_operand.hbm [shape: bf16[128,640], index: 2, kind: input, shape index: {}]   ;;  %s5197_s3 = inlined_call_operand.hbm [shape: f32[1,640], index: 3, kind: input, shape index: {}]   ;;  %s5198_s4 = inlined_call_operand.hbm [shape: bf16[128,640], index: 4, kind: input, shape index: {}]   ;;  %s5199_s5 = inlined_call_operand.hbm [shape: f32[1,640], index: 5, kind: input, shape index: {}]   ;;  %s5200_s6 = inlined_call_operand.hbm [shape: bf16[512,128], index: 6, kind: input, shape index: {}]   ;;  %s5201_s7 = inlined_call_operand.vmem [shape: f32[1,128], index: 7, kind: input, shape index: {}]   ;;  %s5202_s8 = inlined_call_operand.vmem [shape: bf16[256,128], index: 8, kind: output, shape index: {0}]   ;;  %s5203_s9 = inlined_call_operand.hbm [shape: bf16[256,512], index: 9, kind: output, shape index: {1}]  }
   0x1   :  { %5215 = sst [smem:[#allocation82_spill]] %s5194_s0 }
   0x2   :  { %5216 = sst [smem:[#allocation83_spill]] %s5196_s2 }
   0x3   :  { %5217 = sst [smem:[#allocation84_spill]] %s5197_s3 }
   0x4   :  { %5218 = sst [smem:[#allocation85_spill]] %s5198_s4 }
   0x5   :  { %5219 = sst [smem:[#allocation86_spill]] %s5199_s5 }
   0x6   :  { %5220 = sst [smem:[#allocation87_spill]] %s5200_s6 }
   0x7   :  { %15 = vsyncpa [#allocation3], 0 }
   0x8   :  { %17 = vsyncpa [#allocation3 + $0x1], 0 }
   0x9   :  { %18 = vsyncpa [#allocation6], 0 }
   0xa   :  { %20 = vsyncpa [#allocation6 + $0x1], 0 }
   0xb   :  { %21 = vsyncpa [#allocation9], 0 }
   0xc   :  { %22 = vsyncpa [#allocation12], 0 }
   0xd   :  { %23 = vsyncpa [#allocation4], 0 }
   0xe   :  { %25 = vsyncpa [#allocation4 + $0x1], 0  ;;  %s3970_s30 = smov 0   ;;  %s3972_s10 = smov 0  }
   0xf   :  { %s3974_s11 = smov 0   ;;  %s3976_s12 = smov 0  }
  0x10 LB: > { %5221 = sst [smem:[#allocation21_spill]] %s3899_s11  ;;  %s3994_s16 = sadd.s32 4294967295, %s3903_s12   ;;  %s3903_s12 = sphi %s3976_s12, %s5362_s12   ;;  %s3899_s11 = sphi %s3974_s11, %s5359_s11   ;;  %s3895_s10 = sphi %s3972_s10, %s5361_s10   ;;  %s3891_s30 = sphi %s3970_s30, %s5360_s30  }
  0x11   : > { %s5222_s2 = sld [smem:[#allocation83_spill]]  ;;  %p2823_p0 = scmp.ge.s32.totalorder %s3903_s12, 1 }
  0x12   : > { %p52_p1 = scmp.eq.s32.totalorder %s3994_s16, 0  ;;  %p266_p2 = scmp.lt.s32.totalorder %s3903_s12, 3 }
  0x13   : > { %s3905_s18 = smov [#allocation7]   ;;  %s5224_s3 = sld [smem:[#allocation84_spill]] }
  0x14   : > { %p3999_p3 = pnand %p2823_p0, %p266_p2  ;;  %s279_s19 = sshll.u32 %s3905_s18, 4  ;;  %s280_s19 = int_to_ptr.vmem [resolvable:$true] %s279_s19 }
  0x15   : > { %s5226_s5 = sld [smem:[#allocation86_spill]]  ;;  %s3906_s27 = smov [#allocation8]  }
  0x16   : > { %p3506_p4 = pneg %p3999_p3  ;;  %s294_s28 = sshll.u32 %s3906_s27, 4  ;;  %s295_s28 = int_to_ptr.vmem [resolvable:$true] %s294_s28 }
  0x17   : > { %s277_s15 = sshll.u32 %s5222_s2, 4  ;;  %s3907_s29 = smov 320   ;;  %s278_s15 = int_to_ptr.hbm [resolvable:$true] %s277_s15 }
  0x18   : > { %p4011_p6 = pnand %p3506_p4, %p52_p1  ;;  %s3908_s13 = smov 20  }
  0x19   : > { %s292_s22 = sshll.u32 %s5224_s3, 4  ;;  %s5227_s4 = sld [smem:[#allocation85_spill]]  ;;  %s293_s22 = int_to_ptr.hbm [resolvable:$true] %s292_s22 }
  0x1a   : > { %3509 = dma.hbm_to_vmem [thread:$0]  (!%p4011_p6), %s278_s15, 5120, %s280_s19, [#allocation6], %s3907_s29, %s3907_s29, %s3908_s13  }
  0x1b   : > { %s318_s26 = sshll.u32 %s5226_s5, 4  ;;  %s3909_s21 = smov [#allocation11]   ;;  %s319_s26 = int_to_ptr.hbm [resolvable:$true] %s318_s26 }
  0x1c   : > { %3512 = dma.hbm_to_vmem [thread:$0]  (!%p4011_p6), %s293_s22, 80, %s295_s28, [#allocation9]  }
  0x1d   : > { %s320_s2 = sshll.u32 %s3909_s21, 4  ;;  %s3910_s15 = smov [#allocation10]   ;;  %s321_s2 = int_to_ptr.vmem [resolvable:$true] %s320_s2 }
  0x1e   : > { %3518 = dma.hbm_to_vmem [thread:$0]  (!%p4011_p6), %s319_s26, 80, %s321_s2, [#allocation12]  }
  0x1f   : > { %s303_s20 = sshll.u32 %s5227_s4, 4  ;;  %s305_s19 = sshll.u32 %s3910_s15, 4  ;;  %s304_s20 = int_to_ptr.hbm [resolvable:$true] %s303_s20  ;;  %s306_s19 = int_to_ptr.vmem [resolvable:$true] %s305_s19 }
  0x20   : > { %s5228_s6 = sld [smem:[#allocation87_spill]]  ;;  %s3911_s27 = smov [#allocation13]  }
  0x21   : > { %3515 = dma.hbm_to_vmem [thread:$0]  (!%p4011_p6), %s304_s20, 5120, %s306_s19, [#allocation9], %s3907_s29, %s3907_s29, %s3908_s13  }
  0x22   : > { %s331_s2 = sshll.u32 %s3911_s27, 4  ;;  %s3912_s26 = smov 64   ;;  %s332_s2 = int_to_ptr.vmem [resolvable:$true] %s331_s2 }
  0x23   : > { %s3913_s28 = smov 4   ;;  %s2822_s14 = sadd.s32 4294967294, %s3903_s12  }
  0x24   : > { %s4036_s18 = sadd.s32 1, %s3903_s12   ;;  %s38_s21 = sadd.s32 1, %s3899_s11 }
  0x25   : > { %s35_s15 = ssub.s32 %s3903_s12, %s4036_s18  ;;  %p45_p7 = scmp.ne.s32.totalorder %s3899_s11, %s3895_s10 }
  0x26   : > { %s329_s25 = sshll.u32 %s5228_s6, 4  ;;  %p36_p8 = scmp.eq.s32.totalorder %s35_s15, 0  ;;  %s330_s25 = int_to_ptr.hbm [resolvable:$true] %s329_s25 }
  0x27   : > { %3521 = dma.hbm_to_vmem [thread:$0]  (!%p4011_p6), %s330_s25, 4096, %s332_s2, [#allocation12], %s3912_s26, %s3912_s26, %s3913_s28  }
  0x28   : > { %p46_p9 = scmp.eq.s32.totalorder %s3903_s12, 0  ;;  %p51_p10 = scmp.ne.s32.totalorder %s3895_s10, %s3891_s30 }
  0x29   : > { %p253_p11 = scmp.eq.s32.totalorder %s3994_s16, 1  ;;  %p259_p2 = scmp.eq.s32.totalorder %s2822_s14, 1 }
  0x2a   : > { %s4048_s29 = scalar_select %p36_p8, %s3899_s11, %s38_s21  }
  0x2b   : > { %p4050_p12 = por %p46_p9, %p45_p7  ;;  %p4056_p13 = por %p52_p1, %p51_p10 }
  0x2c   : > { %5229 = sst [smem:[#allocation22_spill]] %s4048_s29  ;;  %p4060_p0 = por %p253_p11, %p45_p7 }
  0x2d   : > { %p3538_p4 = scmp.lt.s32.totalorder %s3903_s12, 2  ;;  %s348_s19 = sand.u32 1, %s3899_s11  }
  0x2e   : > { %p4066_p6 = por %p259_p2, %p51_p10  ;;  %s4070_s24 = sshll.u32 %s348_s19, 7 }
  0x2f   : > { %s3301_s25 = sshll.u32 %s3903_s12, 7  ;;  %s5234_s0 = sld [smem:[#allocation82_spill]] }
  0x30   : > { %s352_s21 = scalar_lea.vmem [#allocation2], %s4070_s24  ;;  %p4079_p7 = pnand %p3538_p4, %p4050_p12 }
  0x31   : > { %s360_s15 = sshll.u32 %s352_s21, 4  ;;  %s379_s5 = scalar_lea.hbm %s5195_s1, %s3301_s25  ;;  %s361_s15 = int_to_ptr.vmem [resolvable:$true] %s360_s15 }
  0x32   : > { %s349_s6 = scalar_lea.sflag [#allocation3], %s348_s19  ;;  %p3765_p9 = pneg %p4079_p7 }
  0x35   : > { %s357_s26 = scalar_lea.hbm %s5234_s0, %s3301_s25 }
  0x36   : > { %s358_s28 = sshll.u32 %s357_s26, 4  ;;  %s3768_s26 = scalar_lea.hbm %s5234_s0, 256  ;;  %s359_s28 = int_to_ptr.hbm [resolvable:$true] %s358_s28 }
  0x37   : > { %s3761_s29 = sshra.s32 %s359_s28, 4  ;;  %s3762_s29 = int_to_ptr.hbm [resolvable:$true] %s3761_s29 }
  0x38   : > { %s3763_s27 = scalar_lea.hbm %s3762_s29, 128  ;;  %p3769_p12 = scmp.lt.s32.totalorder %s3762_s29, %s5234_s0 }
  0x39   : > { %p3764_p8 = scmp.ne.s32.totalorder %s3762_s29, %s3763_s27  ;;  %p3770_p2 = scmp.lt.s32.totalorder %s3768_s26, %s3763_s27 }
  0x3b   : > { %p3766_p10 = pnand %p3765_p9, %p3764_p8  ;;  %p3771_p4 = por %p3770_p2, %p3769_p12 }
  0x3d   : > { %p3767_p11 = pneg %p3766_p10 }
  0x3f   : > { %p3772_p5 = pnand %p3771_p4, %p3767_p11 }
  0x41   : > { %3775 = shalt.err (!%p3772_p5)
}
  0x42   : > { %s3914_s4 = smov 128   ;;  %s3915_s19 = smov 8  }
  0x43   : > { %3525 = dma.hbm_to_vmem [thread:$0]  (!%p4079_p7), %s359_s28, 2048, %s361_s15, %s349_s6, %s3914_s4, %s3914_s4, %s3915_s19  }
  0x44   : > { %s380_s25 = sshll.u32 %s379_s5, 4  ;;  %s374_s11 = scalar_lea.vmem [#allocation5], %s4070_s24  ;;  %s381_s25 = int_to_ptr.hbm [resolvable:$true] %s380_s25 }
  0x45   : > { %s382_s13 = sshll.u32 %s374_s11, 4  ;;  %s370_s2 = sand.u32 1, %s3903_s12   ;;  %s383_s13 = int_to_ptr.vmem [resolvable:$true] %s382_s13 }
  0x46   : > { %s371_s21 = scalar_lea.sflag [#allocation6], %s370_s2  ;;  %s3791_s29 = sshra.s32 %s381_s25, 4  ;;  %s3792_s29 = int_to_ptr.hbm [resolvable:$true] %s3791_s29 }
  0x47   : > { %s3793_s27 = scalar_lea.hbm %s3792_s29, 128  ;;  %s3798_s0 = scalar_lea.hbm %s5195_s1, 256 }
  0x48   : > { %p3794_p8 = scmp.ne.s32.totalorder %s3792_s29, %s3793_s27  ;;  %p3799_p11 = scmp.lt.s32.totalorder %s3792_s29, %s5195_s1 }
  0x49   : > { %p3800_p12 = scmp.lt.s32.totalorder %s3798_s0, %s3793_s27 }
  0x4a   : > { %p3796_p5 = pnand %p3794_p8, %p3765_p9 }
  0x4b   : > { %p3801_p2 = por %p3800_p12, %p3799_p11 }
  0x4c   : > { %p3797_p10 = pneg %p3796_p5 }
  0x4e   : > { %p3802_p4 = pnand %p3801_p2, %p3797_p10 }
  0x50   : > { %3805 = shalt.err (!%p3802_p4)
}
  0x51   : > { %3528 = dma.hbm_to_vmem [thread:$0]  (!%p4079_p7), %s381_s25, 2048, %s383_s13, %s371_s21, %s3914_s4, %s3914_s4, %s3915_s19  }
  0x52   : > { %394 = sbr.rel (%p3999_p3) target bundleno = 857 (0x359), region = 52 }
  0x57   : > { %s4115_s11 = sand.u32 1, %s3895_s10  }
  0x58   : > { %s2837_s24 = sshll.u32 %s4115_s11, 7  ;;  %s397_s28 = scalar_lea.sflag [#allocation3], %s4115_s11 }
  0x59   : > { %s4119_s15 = scalar_lea.vmem [#allocation2], %s2837_s24 }
  0x5a   : > { %3866 = dma.done.wait (%p4056_p13), %s397_s28, 2048  }
  0x5b   : > { %3868 = vsyncadd (%p4056_p13), %s397_s28, 4294965248  ;;  %s406_s0 = sand.u32 1, %s3994_s16   ;;  %s4126_s14 = scalar_lea.vmem [#allocation5], %s2837_s24 }
  0x5c   : > { %s407_s17 = scalar_lea.sflag [#allocation6], %s406_s0 }
  0x5d   : > { %3870 = dma.done.wait (%p4056_p13), %s407_s17, 2048  }
  0x5e   : > { %3872 = vsyncadd (%p4056_p13), %s407_s17, 4294965248 }
  0x5f   : > { %3874 = dma.done.wait (%p52_p1), [#allocation6], 5120  }
  0x60   : > { %3876 = vsyncadd (%p52_p1), [#allocation6], 4294962176 }
  0x61   : > { %3878 = dma.done.wait (%p52_p1), [#allocation9], 5200  }
  0x62   : > { %3880 = vsyncadd (%p52_p1), [#allocation9], 4294962096 }
  0x63   : > { %3882 = dma.done.wait (%p52_p1), [#allocation12], 4176  }
  0x64   : > { %3884 = vsyncadd (%p52_p1), [#allocation12], 4294963120  ;;  %v3338_v0 = vld [vmem:[#allocation7 + $0x11c] sm:$0xf]  ;;  %v2991_v1 = vld [vmem:[#allocation7 + $0x12c] sm:$0xf0] }
  0x65   : > { %v3333_v2 = vld [vmem:[#allocation7 + $0xf4] sm:$0xf]  ;;  %v2994_v3 = vor.u32 %v3338_v0, %v2991_v1  ;;  %v2971_v4 = vld [vmem:[#allocation7 + $0x104] sm:$0xf0]  ;;  %v3328_v6 = vld [vmem:[#allocation7 + $0xcc] sm:$0xf] }
  0x66   : > { %v2974_v5 = vor.u32 %v3333_v2, %v2971_v4  ;;  %v2951_v7 = vld [vmem:[#allocation7 + $0xdc] sm:$0xf0]  ;;  %v3323_v9 = vld [vmem:[#allocation7 + $0xa4] sm:$0xf]  ;;  %v2931_v10 = vld [vmem:[#allocation7 + $0xb4] sm:$0xf0] }
  0x67   : > { %855 = vmatpush.bf16.msra.mxu1 %v2994_v3  ;;  %3472 = vmatpush.bf16.msra.mxu3 %v2994_v3  ;;  %v2954_v8 = vor.u32 %v3328_v6, %v2951_v7  ;;  %v2934_v11 = vor.u32 %v3323_v9, %v2931_v10  ;;  %v3318_v12 = vld [vmem:[#allocation7 + $0x7c] sm:$0xf]  ;;  %v2911_v13 = vld [vmem:[#allocation7 + $0x8c] sm:$0xf0]  ;;  %v3313_v15 = vld [vmem:[#allocation7 + $0x54] sm:$0xf] }
  0x68   : > { %v2914_v14 = vor.u32 %v3318_v12, %v2911_v13  ;;  %v2891_v16 = vld [vmem:[#allocation7 + $0x64] sm:$0xf0]  ;;  %v3308_v18 = vld [vmem:[#allocation7 + $0x2c] sm:$0xf]  ;;  %v2871_v19 = vld [vmem:[#allocation7 + $0x3c] sm:$0xf0] }
  0x69   : > { %v2894_v17 = vor.u32 %v3313_v15, %v2891_v16  ;;  %v2874_v20 = vor.u32 %v3308_v18, %v2871_v19  ;;  %v3303_v21 = vld [vmem:[#allocation7 + $0x4] sm:$0xf]  ;;  %v2851_v22 = vld [vmem:[#allocation7 + $0x14] sm:$0xf0]  ;;  %v3149_v23 = vld [vmem:[#allocation10 + $0x118] sm:$0xf] }
  0x6a   : > { %v3380_v24 = vld [vmem:[#allocation10 + $0x128] sm:$0xf0]  ;;  %v2854_v25 = vor.u32 %v3303_v21, %v2851_v22  ;;  %v490_v26 = vld [vmem:[%s4119_s15] sm:$0xff]  ;;  %v491_v27 = vld [vmem:[%s4119_s15 + $0x8] sm:$0xff]  ;;  %s2844_s23 = sshll.u32 %s4115_s11, 8  ;;  %s2845_s13 = sshll.u32 %s3994_s16, 4 }
  0x6b   : > { %856 = vmatpush.bf16.msra.mxu1 %v2974_v5  ;;  %3473 = vmatpush.bf16.msra.mxu3 %v2974_v5  ;;  %v3150_v28 = vor.u32 %v3380_v24, %v3149_v23  ;;  %v3129_v29 = vld [vmem:[#allocation10 + $0xf0] sm:$0xf]  ;;  %v3375_v30 = vld [vmem:[#allocation10 + $0x100] sm:$0xf0]  ;;  %v4146_v31 = vpack.c.bf16 %v491_v27, %v490_v26  ;;  %v3109_v33 = vld [vmem:[#allocation10 + $0xc8] sm:$0xf] }
  0x6c   : > { %v3130_v32 = vor.u32 %v3375_v30, %v3129_v29  ;;  %v3370_v34 = vld [vmem:[#allocation10 + $0xd8] sm:$0xf0]  ;;  %v3089_v36 = vld [vmem:[#allocation10 + $0xa0] sm:$0xf]  ;;  %v3365_v37 = vld [vmem:[#allocation10 + $0xb0] sm:$0xf0] }
  0x6d   : > { %v3110_v35 = vor.u32 %v3370_v34, %v3109_v33  ;;  %v3090_v38 = vor.u32 %v3365_v37, %v3089_v36  ;;  %v3069_v39 = vld [vmem:[#allocation10 + $0x78] sm:$0xf]  ;;  %v3360_v40 = vld [vmem:[#allocation10 + $0x88] sm:$0xf0]  ;;  %v3049_v44 = vld [vmem:[#allocation10 + $0x50] sm:$0xf] }
  0x6e   : > { %v492_v41 = vld [vmem:[%s4119_s15 + $0x10] sm:$0xff]  ;;  %v493_v42 = vld [vmem:[%s4119_s15 + $0x18] sm:$0xff]  ;;  %v3070_v43 = vor.u32 %v3360_v40, %v3069_v39  ;;  %v3355_v45 = vld [vmem:[#allocation10 + $0x60] sm:$0xf0]  ;;  %s4747_s4 = scalar_lea.vmem [#allocation14], %s2844_s23  ;;  %p5124_p1 = scmp.lt.s32.totalorder %s2845_s13, 31 }
  0x6f   : > { %857 = vmatpush.bf16.msra.mxu1 %v2954_v8  ;;  %3474 = vmatpush.bf16.msra.mxu3 %v2954_v8  ;;  %v4151_v46 = vpack.c.bf16 %v493_v42, %v492_v41  ;;  %v3050_v47 = vor.u32 %v3355_v45, %v3049_v44  ;;  %v3029_v48 = vld [vmem:[#allocation10 + $0x28] sm:$0xf]  ;;  %v3350_v49 = vld [vmem:[#allocation10 + $0x38] sm:$0xf0]  ;;  %v2989_v50 = vld [vmem:[#allocation7 + $0x118] sm:$0xf] }
  0x70   : > { %v3340_v51 = vld [vmem:[#allocation7 + $0x128] sm:$0xf0]  ;;  %v3030_v52 = vor.u32 %v3350_v49, %v3029_v48  ;;  %v2969_v54 = vld [vmem:[#allocation7 + $0xf0] sm:$0xf]  ;;  %v3335_v55 = vld [vmem:[#allocation7 + $0x100] sm:$0xf0] }
  0x71   : > { %v2990_v53 = vor.u32 %v3340_v51, %v2989_v50  ;;  %v3009_v56 = vld [vmem:[#allocation10] sm:$0xf]  ;;  %v3345_v57 = vld [vmem:[#allocation10 + $0x10] sm:$0xf0]  ;;  %v2970_v58 = vor.u32 %v3335_v55, %v2969_v54  ;;  %v3165_v2 = vld [vmem:[#allocation10 + $0x128] sm:$0xf] }
  0x72   : > { %v3010_v59 = vor.u32 %v3345_v57, %v3009_v56  ;;  %v494_v60 = vld [vmem:[%s4119_s15 + $0x20] sm:$0xff]  ;;  %v495_v61 = vld [vmem:[%s4119_s15 + $0x28] sm:$0xff]  ;;  %v3330_v0 = vld [vmem:[#allocation7 + $0xd8] sm:$0xf0]  ;;  %s3416_s21 = sshll.u32 %s3994_s16, 8  ;;  %s2651_s3 = sshll.u32 %s4747_s4, 4  ;;  %s2652_s3 = int_to_ptr.vmem [resolvable:$true] %s2651_s3 }
  0x73   : > { %858 = vmatpush.bf16.msra.mxu1 %v2934_v11  ;;  %3475 = vmatpush.bf16.msra.mxu3 %v2934_v11  ;;  %v4156_v62 = vpack.c.bf16 %v495_v61, %v494_v60  ;;  %v2949_v63 = vld [vmem:[#allocation7 + $0xc8] sm:$0xf]  ;;  %v3382_v3 = vld [vmem:[#allocation10 + $0x138] sm:$0xf0]  ;;  %v3325_v6 = vld [vmem:[#allocation7 + $0xb0] sm:$0xf0]  ;;  %s2650_s26 = scalar_lea.hbm %s5203_s9, %s3416_s21 }
  0x74   : > { %3464 = vmatpush.bf16.msra.mxu2 %v2990_v53  ;;  %806 = vmatpush.bf16.msra.mxu0 %v2990_v53  ;;  %v2950_v1 = vor.u32 %v3330_v0, %v2949_v63  ;;  %v2929_v4 = vld [vmem:[#allocation7 + $0xa0] sm:$0xf]  ;;  %v3166_v5 = vor.u32 %v3382_v3, %v3165_v2  ;;  %v2909_v8 = vld [vmem:[#allocation7 + $0x78] sm:$0xf]  ;;  %v3320_v9 = vld [vmem:[#allocation7 + $0x88] sm:$0xf0] }
  0x75   : > { %v2930_v7 = vor.u32 %v3325_v6, %v2929_v4  ;;  %v2910_v10 = vor.u32 %v3320_v9, %v2909_v8  ;;  %v2889_v11 = vld [vmem:[#allocation7 + $0x50] sm:$0xf]  ;;  %v3315_v12 = vld [vmem:[#allocation7 + $0x60] sm:$0xf0]  ;;  %v3310_v18 = vld [vmem:[#allocation7 + $0x38] sm:$0xf0] }
  0x76   : > { %v496_v13 = vld [vmem:[%s4119_s15 + $0x30] sm:$0xff]  ;;  %v2890_v15 = vor.u32 %v3315_v12, %v2889_v11  ;;  %v3377_v21 = vld [vmem:[#allocation10 + $0x110] sm:$0xf0]  ;;  %v2849_v22 = vld [vmem:[#allocation7] sm:$0xf]  ;;  %s2653_s6 = sshll.u32 %s2650_s26, 4  ;;  %s2654_s6 = int_to_ptr.hbm [resolvable:$true] %s2653_s6 }
  0x77   : > { %859 = vmatpush.bf16.msra.mxu1 %v2914_v14  ;;  %3476 = vmatpush.bf16.msra.mxu3 %v2914_v14  ;;  %v497_v14 = vld [vmem:[%s4119_s15 + $0x38] sm:$0xff]  ;;  %v3305_v24 = vld [vmem:[#allocation7 + $0x10] sm:$0xf0]  ;;  %v499_v26 = vld [vmem:[%s4119_s15 + $0x48] sm:$0xff]  ;;  %s2634_s5 = scalar_lea.sflag [#allocation4], %s4115_s11  ;;  %s3835_s24 = sshra.s32 %s2654_s6, 4  ;;  %s3836_s24 = int_to_ptr.hbm [resolvable:$true] %s3835_s24 }
  0x78   : > { %3465 = vmatpush.bf16.msra.mxu2 %v2970_v58  ;;  %807 = vmatpush.bf16.msra.mxu0 %v2970_v58  ;;  %v4161_v16 = vpack.c.bf16 %v497_v14, %v496_v13  ;;  %v2850_v27 = vor.u32 %v3305_v24, %v2849_v22  ;;  %v514_v29 = vld [vmem:[%s4126_s14] sm:$0xff]  ;;  %v515_v30 = vld [vmem:[%s4126_s14 + $0x8] sm:$0xff]  ;;  %v3372_v34 = vld [vmem:[#allocation10 + $0xe8] sm:$0xf0]  ;;  %s3837_s28 = scalar_lea.hbm %s3836_s24, 256  ;;  %s3841_s17 = scalar_lea.hbm %s5203_s9, 512 }
  0x79   : > { %v3125_v33 = vld [vmem:[#allocation10 + $0xd8] sm:$0xf]  ;;  %v3341_v39 = vld [vmem:[#allocation7 + $0x130] sm:$0xf0]  ;;  %v503_v50 = vld [vmem:[%s4119_s15 + $0x68] sm:$0xff]  ;;  %p3838_p3 = scmp.ne.s32.totalorder %s3836_s24, %s3837_s28  ;;  %p3842_p9 = scmp.lt.s32.totalorder %s3836_s24, %s5203_s9 }
  0x7a   : > { %v3126_v36 = vor.u32 %v3372_v34, %v3125_v33  ;;  %v501_v37 = vld [vmem:[%s4119_s15 + $0x58] sm:$0xff]  ;;  %v516_v42 = vld [vmem:[%s4126_s14 + $0x10] sm:$0xff]  ;;  %v502_v48 = vld [vmem:[%s4119_s15 + $0x60] sm:$0xff]  ;;  %p3843_p8 = scmp.lt.s32.totalorder %s3841_s17, %s3837_s28 }
  0x7b   : > { %860 = vmatpush.bf16.msra.mxu1 %v2894_v17  ;;  %3477 = vmatpush.bf16.msra.mxu3 %v2894_v17  ;;  %v2869_v17 = vld [vmem:[#allocation7 + $0x28] sm:$0xf]  ;;  %v3105_v45 = vld [vmem:[#allocation10 + $0xb0] sm:$0xf]  ;;  %v4190_v53 = vpack.c.bf16 %v503_v50, %v502_v48  ;;  %v3339_v55 = vld [vmem:[#allocation7 + $0x124] sm:$0xf]  ;;  %p3839_p13 = pnand %p3838_p3, %p4060_p0 }
  0x7c   : > { %3466 = vmatpush.bf16.msra.mxu2 %v2950_v1  ;;  %808 = vmatpush.bf16.msra.mxu0 %v2950_v1  ;;  %v2870_v19 = vor.u32 %v3310_v18, %v2869_v17  ;;  %v2977_v51 = vld [vmem:[#allocation7 + $0xf8] sm:$0xf]  ;;  %v518_v58 = vld [vmem:[%s4126_s14 + $0x20] sm:$0xff]  ;;  %v3334_v60 = vld [vmem:[#allocation7 + $0xfc] sm:$0xf]  ;;  %p3844_p5 = por %p3843_p8, %p3842_p9 }
  0x7d   : > { %v2999_v56 = vld [vmem:[#allocation7 + $0x134] sm:$0xf0]  ;;  %v2979_v61 = vld [vmem:[#allocation7 + $0x10c] sm:$0xf0]  ;;  %v3005_v1 = vld [vmem:[#allocation7 + $0x128] sm:$0xf]  ;;  %p3840_p7 = pneg %p3839_p13 }
  0x7e   : > { %v3002_v57 = vor.u32 %v3339_v55, %v2999_v56  ;;  %v2982_v63 = vor.u32 %v3334_v60, %v2979_v61  ;;  %v3342_v2 = vld [vmem:[#allocation7 + $0x138] sm:$0xf0]  ;;  %v2957_v4 = vld [vmem:[#allocation7 + $0xd0] sm:$0xf]  ;;  %v3329_v6 = vld [vmem:[#allocation7 + $0xd4] sm:$0xf] }
  0x7f   : > { %861 = vmatpush.bf16.msra.mxu1 %v2874_v20  ;;  %3478 = vmatpush.bf16.msra.mxu3 %v2874_v20  ;;  %v3145_v20 = vld [vmem:[#allocation10 + $0x100] sm:$0xf]  ;;  %v3006_v3 = vor.u32 %v3342_v2, %v3005_v1  ;;  %v3085_v9 = vld [vmem:[#allocation10 + $0x88] sm:$0xf]  ;;  %v2985_v12 = vld [vmem:[#allocation7 + $0x100] sm:$0xf]  ;;  %p3845_p10 = pnand %p3844_p5, %p3840_p7 }
  0x80   : > { %3467 = vmatpush.bf16.msra.mxu2 %v2930_v7  ;;  %809 = vmatpush.bf16.msra.mxu0 %v2930_v7  ;;  %v3146_v23 = vor.u32 %v3377_v21, %v3145_v20  ;;  %v2959_v8 = vld [vmem:[#allocation7 + $0xe4] sm:$0xf0]  ;;  %v3337_v14 = vld [vmem:[#allocation7 + $0x110] sm:$0xf0]  ;;  %v3326_v18 = vld [vmem:[#allocation7 + $0xb8] sm:$0xf0] }
  0x81   : > { %v2962_v11 = vor.u32 %v3329_v6, %v2959_v8  ;;  %v2937_v17 = vld [vmem:[#allocation7 + $0xa8] sm:$0xf]  ;;  %v2939_v21 = vld [vmem:[#allocation7 + $0xbc] sm:$0xf0]  ;;  %v3332_v24 = vld [vmem:[#allocation7 + $0xe8] sm:$0xf0] }
  0x82   : > { %v2938_v20 = vor.u32 %v3326_v18, %v2937_v17  ;;  %v3321_v33 = vld [vmem:[#allocation7 + $0x90] sm:$0xf0]  ;;  %v3319_v34 = vld [vmem:[#allocation7 + $0x84] sm:$0xf]  ;;  %v3314_v48 = vld [vmem:[#allocation7 + $0x5c] sm:$0xf] }
  0x83   : > { %862 = vmatpush.bf16.msra.mxu1 %v2854_v25  ;;  %3479 = vmatpush.bf16.msra.mxu3 %v2854_v25  ;;  %v498_v25 = vld [vmem:[%s4119_s15 + $0x40] sm:$0xff]  ;;  %v2899_v50 = vld [vmem:[#allocation7 + $0x6c] sm:$0xf0]  ;;  %v3322_v55 = vld [vmem:[#allocation7 + $0x98] sm:$0xf0] }
  0x84   : > { %3468 = vmatpush.bf16.msra.mxu2 %v2910_v10  ;;  %810 = vmatpush.bf16.msra.mxu0 %v2910_v10  ;;  %v3362_v10 = vld [vmem:[#allocation10 + $0x98] sm:$0xf0]  ;;  %v2879_v61 = vld [vmem:[#allocation7 + $0x44] sm:$0xf0]  ;;  %v3357_v1 = vld [vmem:[#allocation10 + $0x70] sm:$0xf0] }
  0x85   : > { %v3086_v13 = vor.u32 %v3362_v10, %v3085_v9  ;;  %v3306_v8 = vld [vmem:[#allocation7 + $0x18] sm:$0xf0]  ;;  %v3304_v9 = vld [vmem:[#allocation7 + $0xc] sm:$0xf]  ;;  %v2865_v17 = vld [vmem:[#allocation7 + $0x10] sm:$0xf] }
  0x86   : > { %863 = vmatmul.bf16.vlgmr.msra.gmra.mxu1 %v4146_v31  ;;  %v3307_v18 = vld [vmem:[#allocation7 + $0x20] sm:$0xf0] }
  0x87   : > { %1319 = vmatpush.bf16.msrb.mxu1 %v3150_v28  ;;  %v4166_v28 = vpack.c.bf16 %v499_v26, %v498_v25  ;;  %953 = vmatpush.bf16.msrb.mxu3 %v3002_v57  ;;  %v504_v26 = vld [vmem:[%s4119_s15 + $0x70] sm:$0xff] }
  0x88   : > { %3469 = vmatpush.bf16.msra.mxu2 %v2890_v15  ;;  %811 = vmatpush.bf16.msra.mxu0 %v2890_v15  ;;  %v2986_v15 = vor.u32 %v3337_v14, %v2985_v12  ;;  %v2877_v57 = vld [vmem:[#allocation7 + $0x30] sm:$0xf]  ;;  %v3312_v14 = vld [vmem:[#allocation7 + $0x48] sm:$0xf0] }
  0x89   : > { %883 = vmatmul.bf16.vlgmr.msra.gmra.mxu3 %v4166_v28 }
  0x8b   : > { %1320 = vmatpush.bf16.msrb.mxu1 %v3130_v32  ;;  %v4173_v32 = vpack.c.bf16 %v515_v30, %v514_v29  ;;  %954 = vmatpush.bf16.msrb.mxu3 %v2982_v63  ;;  %v2917_v30 = vld [vmem:[#allocation7 + $0x80] sm:$0xf]  ;;  %v3065_v63 = vld [vmem:[#allocation10 + $0x60] sm:$0xf] }
  0x8c   : > { %3470 = vmatpush.bf16.msra.mxu2 %v2870_v19  ;;  %812 = vmatpush.bf16.msra.mxu0 %v2870_v19  ;;  %v3324_v19 = vld [vmem:[#allocation7 + $0xac] sm:$0xf] }
  0x8d   : > { %v2942_v22 = vor.u32 %v3324_v19, %v2939_v21  ;;  %v2866_v19 = vor.u32 %v3307_v18, %v2865_v17  ;;  %v523_v21 = vld [vmem:[%s4126_s14 + $0x48] sm:$0xff] }
  0x8f   : > { %1321 = vmatpush.bf16.msrb.mxu1 %v3110_v35  ;;  %v500_v35 = vld [vmem:[%s4119_s15 + $0x50] sm:$0xff]  ;;  %955 = vmatpush.bf16.msrb.mxu3 %v2962_v11  ;;  %v2859_v11 = vld [vmem:[#allocation7 + $0x1c] sm:$0xf0] }
  0x90   : > { %3471 = vmatpush.bf16.msra.mxu2 %v2850_v27  ;;  %813 = vmatpush.bf16.msra.mxu0 %v2850_v27  ;;  %v4178_v40 = vpack.c.bf16 %v501_v37, %v500_v35  ;;  %v505_v27 = vld [vmem:[%s4119_s15 + $0x78] sm:$0xff]  ;;  %v2918_v35 = vor.u32 %v3321_v33, %v2917_v30  ;;  %v2945_v37 = vld [vmem:[#allocation7 + $0xb0] sm:$0xf]  ;;  %v2862_v12 = vor.u32 %v3304_v9, %v2859_v11 }
  0x91   : > { %v4202_v29 = vpack.c.bf16 %v505_v27, %v504_v26  ;;  %v524_v30 = vld [vmem:[%s4126_s14 + $0x50] sm:$0xff]  ;;  %v525_v33 = vld [vmem:[%s4126_s14 + $0x58] sm:$0xff] }
  0x92   : > { %v3117_v11 = vld [vmem:[#allocation10 + $0xd0] sm:$0xf] }
  0x93   : > { %1322 = vmatpush.bf16.msrb.mxu1 %v3090_v38  ;;  %834 = vmatmul.bf16.vlgmr.msra.gmra.mxu2 %v4166_v28  ;;  %v2997_v38 = vld [vmem:[#allocation7 + $0x120] sm:$0xf] }
  0x94   : > { %814 = vmatmul.bf16.vlgmr.msra.gmra.mxu0 %v4146_v31  ;;  %v2998_v41 = vor.u32 %v3341_v39, %v2997_v38  ;;  %956 = vmatpush.bf16.msrb.mxu3 %v2942_v22  ;;  %v3327_v38 = vld [vmem:[#allocation7 + $0xc0] sm:$0xf0] }
  0x95   : > { %1002 = vmatpush.bf16.msrb.mxu0 %v3006_v3  ;;  %v2905_v3 = vld [vmem:[#allocation7 + $0x60] sm:$0xf] }
  0x96   : > { %868 = vmatmul.bf16.gmra.mxu1 %v4151_v46  ;;  %904 = vmatpush.bf16.msrb.mxu2 %v2998_v41  ;;  %v2946_v41 = vor.u32 %v3327_v38, %v2945_v37  ;;  %v3025_v37 = vld [vmem:[#allocation10 + $0x10] sm:$0xf] }
  0x97   : > { %1323 = vmatpush.bf16.msrb.mxu1 %v3070_v43  ;;  %v517_v43 = vld [vmem:[%s4126_s14 + $0x18] sm:$0xff] }
  0x98   : > { %v4185_v44 = vpack.c.bf16 %v517_v43, %v516_v42  ;;  %v520_v42 = vld [vmem:[%s4126_s14 + $0x30] sm:$0xff]  ;;  %v521_v43 = vld [vmem:[%s4126_s14 + $0x38] sm:$0xff] }
  0x99   : > { %888 = vmatmul.bf16.gmra.mxu3 %v4178_v40  ;;  %1003 = vmatpush.bf16.msrb.mxu0 %v2986_v15 }
  0x9b   : > { %1324 = vmatpush.bf16.msrb.mxu1 %v3050_v47  ;;  %v3367_v47 = vld [vmem:[#allocation10 + $0xc0] sm:$0xf0] }
  0x9c   : > { %v3106_v49 = vor.u32 %v3367_v47, %v3105_v45  ;;  %v2897_v45 = vld [vmem:[#allocation7 + $0x58] sm:$0xf]  ;;  %v3316_v47 = vld [vmem:[#allocation7 + $0x68] sm:$0xf0] }
  0x9f   : > { %1325 = vmatpush.bf16.msrb.mxu1 %v3030_v52  ;;  %v3336_v52 = vld [vmem:[#allocation7 + $0x108] sm:$0xf0] }
  0xa0   : > { %v2978_v54 = vor.u32 %v3336_v52, %v2977_v51  ;;  %v4209_v51 = vpack.c.bf16 %v521_v43, %v520_v42  ;;  %v2902_v52 = vor.u32 %v3314_v48, %v2899_v50  ;;  %v3157_v43 = vld [vmem:[#allocation10 + $0x120] sm:$0xf] }
  0xa1   : > { %v526_v48 = vld [vmem:[%s4126_s14 + $0x60] sm:$0xff] }
  0xa2   : > { %905 = vmatpush.bf16.msrb.mxu2 %v2978_v54  ;;  %v2925_v54 = vld [vmem:[#allocation7 + $0x88] sm:$0xf] }
  0xa3   : > { %1326 = vmatpush.bf16.msrb.mxu1 %v3010_v59  ;;  %839 = vmatmul.bf16.gmra.mxu2 %v4178_v40  ;;  %v519_v59 = vld [vmem:[%s4126_s14 + $0x28] sm:$0xff]  ;;  %v2926_v56 = vor.u32 %v3322_v55, %v2925_v54 }
  0xa4   : > { %819 = vmatmul.bf16.gmra.mxu0 %v4151_v46  ;;  %v4197_v0 = vpack.c.bf16 %v519_v59, %v518_v58  ;;  %v3311_v58 = vld [vmem:[#allocation7 + $0x40] sm:$0xf0]  ;;  %v3309_v59 = vld [vmem:[#allocation7 + $0x34] sm:$0xf]  ;;  %v3131_v54 = vld [vmem:[#allocation10 + $0x104] sm:$0xf0] }
  0xa5   : > { %v2878_v60 = vor.u32 %v3311_v58, %v2877_v57  ;;  %v2882_v2 = vor.u32 %v3309_v59, %v2879_v61  ;;  %v3379_v55 = vld [vmem:[#allocation10 + $0x124] sm:$0xf]  ;;  %v3159_v57 = vld [vmem:[#allocation10 + $0x134] sm:$0xf0]  ;;  %v3376_v61 = vld [vmem:[#allocation10 + $0x108] sm:$0xf0] }
  0xa6   : > { %873 = vmatmul.bf16.gmra.mxu1 %v4156_v62  ;;  %v3162_v58 = vor.u32 %v3379_v55, %v3159_v57  ;;  %v3071_v55 = vld [vmem:[#allocation10 + $0x8c] sm:$0xf0] }
  0xa7   : > { %1515 = vmatpush.bf16.msra.mxu1 %v3166_v5  ;;  %v3331_v5 = vld [vmem:[#allocation7 + $0xe0] sm:$0xf0] }
  0xa8   : > { %v2958_v7 = vor.u32 %v3331_v5, %v2957_v4  ;;  %v3066_v4 = vor.u32 %v3357_v1, %v3065_v63  ;;  %v3317_v5 = vld [vmem:[#allocation7 + $0x70] sm:$0xf0] }
  0xa9   : > { %893 = vmatmul.bf16.gmra.mxu3 %v4190_v53  ;;  %v2906_v6 = vor.u32 %v3317_v5, %v2905_v3  ;;  %v528_v1 = vld [vmem:[%s4126_s14 + $0x70] sm:$0xff]  ;;  %v3111_v5 = vld [vmem:[#allocation10 + $0xdc] sm:$0xf0] }
  0xaa   : > { %906 = vmatpush.bf16.msrb.mxu2 %v2958_v7  ;;  %v2857_v7 = vld [vmem:[#allocation7 + $0x8] sm:$0xf] }
  0xab   : > { %1516 = vmatpush.bf16.msra.mxu1 %v3146_v23  ;;  %v2965_v23 = vld [vmem:[#allocation7 + $0xd8] sm:$0xf]  ;;  %v2858_v10 = vor.u32 %v3306_v8, %v2857_v7 }
  0xac   : > { %v2966_v25 = vor.u32 %v3332_v24, %v2965_v23  ;;  %v3045_v24 = vld [vmem:[#allocation10 + $0x38] sm:$0xf]  ;;  %v3139_v8 = vld [vmem:[#allocation10 + $0x10c] sm:$0xf0] }
  0xae   : > { %907 = vmatpush.bf16.msrb.mxu2 %v2938_v20  ;;  %1004 = vmatpush.bf16.msrb.mxu0 %v2966_v25  ;;  %v522_v20 = vld [vmem:[%s4126_s14 + $0x40] sm:$0xff]  ;;  %v3352_v25 = vld [vmem:[#allocation10 + $0x48] sm:$0xf0] }
  0xaf   : > { %1517 = vmatpush.bf16.msra.mxu1 %v3126_v36  ;;  %v2919_v36 = vld [vmem:[#allocation7 + $0x94] sm:$0xf0]  ;;  %v4216_v22 = vpack.c.bf16 %v523_v21, %v522_v20  ;;  %v3046_v26 = vor.u32 %v3352_v25, %v3045_v24  ;;  %v3363_v21 = vld [vmem:[#allocation10 + $0xa4] sm:$0xf]  ;;  %v3091_v24 = vld [vmem:[#allocation10 + $0xb4] sm:$0xf0] }
  0xb0   : > { %v2922_v39 = vor.u32 %v3319_v34, %v2919_v36  ;;  %v4228_v34 = vpack.c.bf16 %v525_v33, %v524_v30  ;;  %v3151_v36 = vld [vmem:[#allocation10 + $0x12c] sm:$0xf0]  ;;  %v3369_v25 = vld [vmem:[#allocation10 + $0xd4] sm:$0xf]  ;;  %v3119_v30 = vld [vmem:[#allocation10 + $0xe4] sm:$0xf0] }
  0xb1   : > { %v3122_v33 = vor.u32 %v3369_v25, %v3119_v30  ;;  %v3079_v25 = vld [vmem:[#allocation10 + $0x94] sm:$0xf0] }
  0xb2   : > { %908 = vmatpush.bf16.msrb.mxu2 %v2918_v35  ;;  %957 = vmatpush.bf16.msrb.mxu3 %v2922_v39  ;;  %v3347_v39 = vld [vmem:[#allocation10 + $0x20] sm:$0xf0] }
  0xb3   : > { %1518 = vmatpush.bf16.msra.mxu1 %v3106_v49  ;;  %844 = vmatmul.bf16.gmra.mxu2 %v4190_v53  ;;  %v2898_v49 = vor.u32 %v3316_v47, %v2897_v45  ;;  %v3381_v45 = vld [vmem:[#allocation10 + $0x130] sm:$0xf0] }
  0xb4   : > { %824 = vmatmul.bf16.gmra.mxu0 %v4156_v62  ;;  %v3158_v47 = vor.u32 %v3381_v45, %v3157_v43  ;;  %v3366_v43 = vld [vmem:[#allocation10 + $0xb8] sm:$0xf0] }
  0xb5   : > { %1005 = vmatpush.bf16.msrb.mxu0 %v2946_v41  ;;  %v3026_v41 = vor.u32 %v3347_v39, %v3025_v37 }
  0xb6   : > { %878 = vmatmul.bf16.gmra.mxu1 %v4161_v16  ;;  %909 = vmatpush.bf16.msrb.mxu2 %v2898_v49 }
  0xb7   : > { %1519 = vmatpush.bf16.msra.mxu1 %v3086_v13  ;;  %958 = vmatpush.bf16.msrb.mxu3 %v2902_v52  ;;  %v2885_v13 = vld [vmem:[#allocation7 + $0x38] sm:$0xf] }
  0xb8   : > { %v2886_v15 = vor.u32 %v3312_v14, %v2885_v13  ;;  %v3373_v52 = vld [vmem:[#allocation10 + $0xf4] sm:$0xf]  ;;  %v4262_v14 = vld [vmem:[#allocation8] sm:$0x1f] }
  0xb9   : > { %898 = vmatmul.bf16.gmra.mxu3 %v4202_v29  ;;  %1006 = vmatpush.bf16.msrb.mxu0 %v2926_v56  ;;  %v3134_v56 = vor.u32 %v3373_v52, %v3131_v54  ;;  %v3358_v54 = vld [vmem:[#allocation10 + $0x7c] sm:$0xf] }
  0xba   : > { %910 = vmatpush.bf16.msrb.mxu2 %v2878_v60  ;;  %v3137_v60 = vld [vmem:[#allocation10 + $0xf8] sm:$0xf]  ;;  %v3074_v57 = vor.u32 %v3358_v54, %v3071_v55 }
  0xbb   : > { %959 = vmatpush.bf16.msrb.mxu3 %v2882_v2  ;;  %1520 = vmatpush.bf16.msra.mxu1 %v3066_v4  ;;  %v3138_v63 = vor.u32 %v3376_v61, %v3137_v60  ;;  %v529_v2 = vld [vmem:[%s4126_s14 + $0x78] sm:$0xff]  ;;  %v3368_v4 = vld [vmem:[#allocation10 + $0xcc] sm:$0xf] }
  0xbc   : > { %v3114_v7 = vor.u32 %v3368_v4, %v3111_v5  ;;  %v3077_v5 = vld [vmem:[#allocation10 + $0x80] sm:$0xf] }
  0xbd   : > { %1007 = vmatpush.bf16.msrb.mxu0 %v2906_v6  ;;  %v3374_v6 = vld [vmem:[#allocation10 + $0xfc] sm:$0xf] }
  0xbe   : > { %911 = vmatpush.bf16.msrb.mxu2 %v2858_v10  ;;  %v3142_v9 = vor.u32 %v3374_v6, %v3139_v8  ;;  %v3361_v6 = vld [vmem:[#allocation10 + $0x90] sm:$0xf0] }
  0xbf   : > { %960 = vmatpush.bf16.msrb.mxu3 %v2862_v12  ;;  %1521 = vmatpush.bf16.msra.mxu1 %v3046_v26  ;;  %v3371_v12 = vld [vmem:[#allocation10 + $0xe0] sm:$0xf0]  ;;  %v3094_v26 = vor.u32 %v3363_v21, %v3091_v24 }
  0xc0   : > { %v3359_v21 = vld [vmem:[#allocation10 + $0x84] sm:$0xf] }
  0xc1   : > { %1008 = vmatpush.bf16.msrb.mxu0 %v2886_v15  ;;  %v3118_v15 = vor.u32 %v3371_v12, %v3117_v11 }
  0xc3   : > { %849 = vmatmul.bf16.gmra.mxu2 %v4202_v29  ;;  %1522 = vmatpush.bf16.msra.mxu1 %v3026_v41  ;;  %v3097_v41 = vld [vmem:[#allocation10 + $0xa8] sm:$0xf] }
  0xc4   : > { %829 = vmatmul.bf16.gmra.mxu0 %v4161_v16  ;;  %1417 = vmatpush.bf16.msra.mxu3 %v3158_v47 }
  0xc5   : > { %1009 = vmatpush.bf16.msrb.mxu0 %v2866_v19 }
  0xc6   : > { %1327 = vmatmul.bf16.vlgmr.msrb.gmra.mxu1 %v4173_v32 }
  0xc8   : > { %1418 = vmatpush.bf16.msra.mxu3 %v3138_v63 }
  0xc9   : > { %961 = vmatmul.bf16.vlgmr.msrb.gmra.mxu3 %v4146_v31  ;;  %1466 = vmatpush.bf16.msra.mxu0 %v3162_v58  ;;  %v3099_v58 = vld [vmem:[#allocation10 + $0xbc] sm:$0xf0] }
  0xcc   : > { %1419 = vmatpush.bf16.msra.mxu3 %v3118_v15  ;;  %v3353_v15 = vld [vmem:[#allocation10 + $0x54] sm:$0xf] }
  0xcd   : > { %1467 = vmatpush.bf16.msra.mxu0 %v3142_v9 }
  0xd1   : > { %1468 = vmatpush.bf16.msra.mxu0 %v3122_v33 }
  0xd3   : > { %912 = vmatmul.bf16.vlgmr.msrb.gmra.mxu2 %v4146_v31 }
  0xd4   : > { %1010 = vmatmul.bf16.vlgmr.msrb.gmra.mxu0 %v4146_v31  ;;  %v3378_v31 = vld [vmem:[#allocation10 + $0x11c] sm:$0xf] }
  0xd5   : > { %v3154_v38 = vor.u32 %v3378_v31, %v3151_v36 }
  0xd6   : > { %1332 = vmatmul.bf16.gmra.mxu1 %v4185_v44 }
  0xd7   : > { %1368 = vmatpush.bf16.msra.mxu2 %v3154_v38 }
  0xd9   : > { %966 = vmatmul.bf16.gmra.mxu3 %v4151_v46 }
  0xdb   : > { %1369 = vmatpush.bf16.msra.mxu2 %v3134_v56  ;;  %v3364_v56 = vld [vmem:[#allocation10 + $0xac] sm:$0xf] }
  0xdc   : > { %v3102_v60 = vor.u32 %v3364_v56, %v3099_v58 }
  0xde   : > { %1469 = vmatpush.bf16.msra.mxu0 %v3102_v60  ;;  %v3348_v60 = vld [vmem:[#allocation10 + $0x2c] sm:$0xf] }
  0xdf   : > { %1370 = vmatpush.bf16.msra.mxu2 %v3114_v7 }
  0xe3   : > { %917 = vmatmul.bf16.gmra.mxu2 %v4151_v46 }
  0xe4   : > { %1015 = vmatmul.bf16.gmra.mxu0 %v4151_v46  ;;  %v527_v46 = vld [vmem:[%s4126_s14 + $0x68] sm:$0xff]  ;;  %1371 = vmatpush.bf16.msra.mxu2 %v3094_v26  ;;  %v3082_v26 = vor.u32 %v3359_v21, %v3079_v25 }
  0xe5   : > { %v4240_v49 = vpack.c.bf16 %v527_v46, %v526_v48  ;;  %v3343_v25 = vld [vmem:[#allocation10 + $0x4] sm:$0xf] }
  0xe6   : > { %1337 = vmatmul.bf16.gmra.mxu1 %v4197_v0  ;;  %1470 = vmatpush.bf16.msra.mxu0 %v3082_v26  ;;  %v3011_v26 = vld [vmem:[#allocation10 + $0x14] sm:$0xf0] }
  0xe8   : > { %1372 = vmatpush.bf16.msra.mxu2 %v3074_v57 }
  0xe9   : > { %971 = vmatmul.bf16.gmra.mxu3 %v4156_v62 }
  0xf3   : > { %922 = vmatmul.bf16.gmra.mxu2 %v4156_v62 }
  0xf4   : > { %1020 = vmatmul.bf16.gmra.mxu0 %v4156_v62  ;;  %v4252_v62 = vpack.c.bf16 %v529_v2, %v528_v1 }
  0xf6   : > { %1342 = vmatmul.bf16.gmra.mxu1 %v4209_v51 }
  0xf9   : > { %976 = vmatmul.bf16.gmra.mxu3 %v4161_v16 }
 0x103   : > { %v4218_v23 = vpop.f32.mrf.mxu1  ;;  %927 = vmatmul.bf16.gmra.mxu2 %v4161_v16 }
 0x104   : > { %1025 = vmatmul.bf16.gmra.mxu0 %v4161_v16  ;;  %v4268_v16 = vperm.slane %v4262_v14, 0 }
 0x106   : > { %1347 = vmatmul.bf16.gmra.mxu1 %v4216_v22  ;;  %5240 = vst [vmem:[#allocation27_spill] sm:$0xff] %v4268_v16 }
 0x109   : > { %981 = vmatmul.bf16.gmra.mxu3 %v4166_v28 }
 0x10b   : > { %v4222_v27 = vpop.f32.mrf.mxu1 }
 0x10c   : > { %v4264_v17 = vpop.f32.mrf.mxu3 }
 0x10d   : > { %5239 = vst [vmem:[#allocation26_spill] sm:$0xff] %v4264_v17 }
 0x111   : > { %v4260_v13 = vpop.f32.mrf.mxu0 }
 0x113   : > { %v4230_v35 = vpop.f32.mrf.mxu1  ;;  %932 = vmatmul.bf16.gmra.mxu2 %v4166_v28 }
 0x114   : > { %1030 = vmatmul.bf16.gmra.mxu0 %v4166_v28  ;;  %v4280_v36 = vpop.f32.mrf.mxu3  ;;  %v3098_v28 = vor.u32 %v3366_v43, %v3097_v41 }
 0x115   : > { %5242 = vst [vmem:[#allocation29_spill] sm:$0xff] %v4280_v36 }
 0x116   : > { %1352 = vmatmul.bf16.gmra.mxu1 %v4228_v34  ;;  %v835_v18 = vpop.f32.mrf.mxu2  ;;  %1420 = vmatpush.bf16.msra.mxu3 %v3098_v28  ;;  %v3057_v28 = vld [vmem:[#allocation10 + $0x58] sm:$0xf] }
 0x117   : > { %v4272_v19 = vadd.f32 %v835_v18, %v4268_v16  ;;  %v3051_v18 = vld [vmem:[#allocation10 + $0x64] sm:$0xf0] }
 0x118   : > { %v3054_v24 = vor.u32 %v3353_v15, %v3051_v18  ;;  %v3351_v15 = vld [vmem:[#allocation10 + $0x40] sm:$0xf0] }
 0x119   : > { %5241 = vst [vmem:[#allocation28_spill] sm:$0xff] %v4272_v19  ;;  %v4278_v31 = vpop.f32.mrf.mxu0  ;;  %986 = vmatmul.bf16.gmra.mxu3 %v4178_v40  ;;  %v3398_v19 = vld [vmem:[#allocation13 + $0x78] sm:$0xff] }
 0x11a   : > { %1373 = vmatpush.bf16.msra.mxu2 %v3054_v24 }
 0x11b   : > { %v4234_v42 = vpop.f32.mrf.mxu1 }
 0x11c   : > { %v4290_v47 = vpop.f32.mrf.mxu3 }
 0x11d   : > { %5244 = vst [vmem:[#allocation31_spill] sm:$0xff] %v4290_v47  ;;  %v3399_v47 = vld [vmem:[#allocation13 + $0x80] sm:$0xff] }
 0x11e   : > { %v837_v37 = vpop.f32.mrf.mxu2 }
 0x11f   : > { %v4283_v38 = vadd.f32 %v837_v37, %v4268_v16 }
 0x121   : > { %5243 = vst [vmem:[#allocation30_spill] sm:$0xff] %v4283_v38  ;;  %v4288_v45 = vpop.f32.mrf.mxu0 }
 0x123   : > { %v4242_v50 = vpop.f32.mrf.mxu1  ;;  %937 = vmatmul.bf16.gmra.mxu2 %v4178_v40 }
 0x124   : > { %1035 = vmatmul.bf16.gmra.mxu0 %v4178_v40  ;;  %v4302_v63 = vpop.f32.mrf.mxu3  ;;  %v3078_v40 = vor.u32 %v3361_v6, %v3077_v5  ;;  %v3354_v5 = vld [vmem:[#allocation10 + $0x5c] sm:$0xf] }
 0x125   : > { %5246 = vst [vmem:[#allocation33_spill] sm:$0xff] %v4302_v63  ;;  %v3391_v63 = vld [vmem:[#allocation13 + $0x40] sm:$0xff] }
 0x126   : > { %1357 = vmatmul.bf16.gmra.mxu1 %v4240_v49  ;;  %v840_v48 = vpop.f32.mrf.mxu2  ;;  %1421 = vmatpush.bf16.msra.mxu3 %v3078_v40  ;;  %v3059_v40 = vld [vmem:[#allocation10 + $0x6c] sm:$0xf0] }
 0x127   : > { %v4294_v46 = vadd.f32 %v840_v48, %v4268_v16  ;;  %v3356_v48 = vld [vmem:[#allocation10 + $0x68] sm:$0xf0]  ;;  %v3062_v18 = vor.u32 %v3354_v5, %v3059_v40  ;;  %v3039_v5 = vld [vmem:[#allocation10 + $0x44] sm:$0xf0] }
 0x129   : > { %5245 = vst [vmem:[#allocation32_spill] sm:$0xff] %v4294_v46  ;;  %v4300_v61 = vpop.f32.mrf.mxu0  ;;  %991 = vmatmul.bf16.gmra.mxu3 %v4190_v53  ;;  %1471 = vmatpush.bf16.msra.mxu0 %v3062_v18 }
 0x12b   : > { %v4246_v59 = vpop.f32.mrf.mxu1 }
 0x12c   : > { %5236 = vst [vmem:[#allocation23_spill] sm:$0xff] %v4246_v59  ;;  %v4312_v8 = vpop.f32.mrf.mxu3 }
 0x12d   : > { %5248 = vst [vmem:[#allocation35_spill] sm:$0xff] %v4312_v8 }
 0x12e   : > { %v842_v1 = vpop.f32.mrf.mxu2 }
 0x12f   : > { %v4305_v2 = vadd.f32 %v842_v1, %v4268_v16  ;;  %v3031_v1 = vld [vmem:[#allocation10 + $0x3c] sm:$0xf0] }
 0x130   : > { %v3034_v6 = vor.u32 %v3348_v60, %v3031_v1  ;;  %v3349_v1 = vld [vmem:[#allocation10 + $0x34] sm:$0xf] }
 0x131   : > { %5247 = vst [vmem:[#allocation34_spill] sm:$0xff] %v4305_v2  ;;  %v4310_v7 = vpop.f32.mrf.mxu0 }
 0x132   : > { %1374 = vmatpush.bf16.msra.mxu2 %v3034_v6  ;;  %v3042_v6 = vor.u32 %v3349_v1, %v3039_v5 }
 0x133   : > { %v4254_v3 = vpop.f32.mrf.mxu1  ;;  %942 = vmatmul.bf16.gmra.mxu2 %v4190_v53 }
 0x134   : > { %5237 = vst [vmem:[#allocation24_spill] sm:$0xff] %v4254_v3  ;;  %1040 = vmatmul.bf16.gmra.mxu0 %v4190_v53  ;;  %v4324_v33 = vpop.f32.mrf.mxu3  ;;  %v3058_v53 = vor.u32 %v3356_v48, %v3057_v28  ;;  %v3014_v48 = vor.u32 %v3343_v25, %v3011_v26 }
 0x135   : > { %5251 = vst [vmem:[#allocation38_spill] sm:$0xff] %v4324_v33  ;;  %1472 = vmatpush.bf16.msra.mxu0 %v3042_v6  ;;  %v5207_v33 = vmov 0  }
 0x136   : > { %1362 = vmatmul.bf16.gmra.mxu1 %v4252_v62  ;;  %v845_v9 = vpop.f32.mrf.mxu2  ;;  %1422 = vmatpush.bf16.msra.mxu3 %v3058_v53  ;;  %v3346_v53 = vld [vmem:[#allocation10 + $0x18] sm:$0xf0] }
 0x137   : > { %v4316_v11 = vadd.f32 %v845_v9, %v4268_v16  ;;  %v3037_v9 = vld [vmem:[#allocation10 + $0x30] sm:$0xf]  ;;  %1375 = vmatpush.bf16.msra.mxu2 %v3014_v48  ;;  %3592 = vset.pattern.permute.xlu0 %v5207_v33 }
 0x138   : > { %v3038_v21 = vor.u32 %v3351_v15, %v3037_v9  ;;  %v3344_v9 = vld [vmem:[#allocation10 + $0xc] sm:$0xf]  ;;  %v3019_v15 = vld [vmem:[#allocation10 + $0x1c] sm:$0xf0]  ;;  %3594 = vset.pattern.permute.xlu2 %v5207_v33 }
 0x139   : > { %5249 = vst [vmem:[#allocation36_spill] sm:$0xff] %v4316_v11  ;;  %v4322_v30 = vpop.f32.mrf.mxu0  ;;  %996 = vmatmul.bf16.gmra.mxu3 %v4202_v29  ;;  %v3022_v18 = vor.u32 %v3344_v9, %v3019_v15 }
 0x13a   : > { %5250 = vst [vmem:[#allocation37_spill] sm:$0xff] %v4322_v30  ;;  %1423 = vmatpush.bf16.msra.mxu3 %v3038_v21 }
 0x13b   : > { %v4258_v10 = vpop.f32.mrf.mxu1  ;;  %1473 = vmatpush.bf16.msra.mxu0 %v3022_v18 }
 0x13c   : > { %5238 = vst [vmem:[#allocation25_spill] sm:$0xff] %v4258_v10  ;;  %v4338_v57 = vpop.f32.mrf.mxu3  ;;  %v4643_v10 = vadd.f32 %v4278_v31, %v4268_v16 }
 0x13d   : > { %5256 = vst [vmem:[#allocation43_spill] sm:$0xff] %v4338_v57 }
 0x13e   : > { %v847_v37 = vpop.f32.mrf.mxu2 }
 0x13f   : > { %v4327_v41 = vadd.f32 %v847_v37, %v4268_v16  ;;  %v3017_v37 = vld [vmem:[#allocation10 + $0x8] sm:$0xf] }
 0x140   : > { %v3018_v60 = vor.u32 %v3346_v53, %v3017_v37 }
 0x141   : > { %5252 = vst [vmem:[#allocation39_spill] sm:$0xff] %v4327_v41  ;;  %v4332_v54 = vpop.f32.mrf.mxu0  ;;  %v5205_v41 = vmov 1  }
 0x142   : > { %5254 = vst [vmem:[#allocation41_spill] sm:$0xff] %v4332_v54  ;;  %1424 = vmatpush.bf16.msra.mxu3 %v3018_v60  ;;  %3593 = vset.pattern.permute.xlu1 %v5205_v41  ;;  %v3405_v54 = vld [vmem:[#allocation13 + $0xb0] sm:$0xff] }
 0x143   : > { %v4274_v20 = vpop.f32.mrf.mxu1  ;;  %947 = vmatmul.bf16.gmra.mxu2 %v4202_v29 }
 0x144   : > { %1045 = vmatmul.bf16.gmra.mxu0 %v4202_v29 }
 0x146   : > { %1523 = vmatmul.bf16.vlgmr.msra.gmra.mxu1 %v4173_v32  ;;  %v850_v55 = vpop.f32.mrf.mxu2  ;;  %2417 = vmatpush.bf16.msrb.mxu3 %v3398_v19 }
 0x147   : > { %v4336_v56 = vadd.f32 %v850_v55, %v4268_v16  ;;  %v4349_v55 = vpop.f32.mrf.mxu3 }
 0x148   : > { %5260 = vst [vmem:[#allocation47_spill] sm:$0xff] %v4349_v55 }
 0x149   : > { %5255 = vst [vmem:[#allocation42_spill] sm:$0xff] %v4336_v56  ;;  %v4344_v24 = vpop.f32.mrf.mxu0  ;;  %1425 = vmatmul.bf16.vlgmr.msra.gmra.mxu3 %v4173_v32 }
 0x14a   : > { %5258 = vst [vmem:[#allocation45_spill] sm:$0xff] %v4344_v24  ;;  %v4440_v24 = vld [vmem:[#allocation11] sm:$0x1f] }
 0x14b   : > { %v4285_v39 = vpop.f32.mrf.mxu1 }
 0x14e   : > { %v852_v28 = vpop.f32.mrf.mxu2 }
 0x14f   : > { %v4347_v29 = vadd.f32 %v852_v28, %v4268_v16  ;;  %v4357_v25 = vpop.f32.mrf.mxu3 }
 0x151   : > { %5259 = vst [vmem:[#allocation46_spill] sm:$0xff] %v4347_v29  ;;  %v4359_v26 = vpop.f32.mrf.mxu0 }
 0x153   : > { %v4296_v52 = vpop.f32.mrf.mxu1  ;;  %1376 = vmatmul.bf16.vlgmr.msra.gmra.mxu2 %v4173_v32 }
 0x154   : > { %1474 = vmatmul.bf16.vlgmr.msra.gmra.mxu0 %v4173_v32 }
 0x156   : > { %1528 = vmatmul.bf16.gmra.mxu1 %v4185_v44  ;;  %v4355_v21 = vpop.f32.mrf.mxu2 }
 0x157   : > { %v4367_v48 = vpop.f32.mrf.mxu3 }
 0x159   : > { %v4369_v53 = vpop.f32.mrf.mxu0  ;;  %1430 = vmatmul.bf16.gmra.mxu3 %v4185_v44 }
 0x15b   : > { %v4307_v4 = vpop.f32.mrf.mxu1 }
 0x15e   : > { %v4365_v28 = vpop.f32.mrf.mxu2 }
 0x15f   : > { %v4377_v5 = vpop.f32.mrf.mxu3 }
 0x161   : > { %v4379_v6 = vpop.f32.mrf.mxu0 }
 0x163   : > { %v4318_v12 = vpop.f32.mrf.mxu1  ;;  %1381 = vmatmul.bf16.gmra.mxu2 %v4185_v44 }
 0x164   : > { %1479 = vmatmul.bf16.gmra.mxu0 %v4185_v44 }
 0x166   : > { %1533 = vmatmul.bf16.gmra.mxu1 %v4197_v0  ;;  %v4375_v1 = vpop.f32.mrf.mxu2 }
 0x167   : > { %v4387_v15 = vpop.f32.mrf.mxu3 }
 0x169   : > { %v4389_v18 = vpop.f32.mrf.mxu0  ;;  %1435 = vmatmul.bf16.gmra.mxu3 %v4197_v0 }
 0x16b   : > { %v4329_v43 = vpop.f32.mrf.mxu1 }
 0x16c   : > { %5253 = vst [vmem:[#allocation40_spill] sm:$0xff] %v4329_v43 }
 0x16e   : > { %v4385_v9 = vpop.f32.mrf.mxu2 }
 0x16f   : > { %v4397_v56 = vpop.f32.mrf.mxu3 }
 0x171   : > { %v4399_v57 = vpop.f32.mrf.mxu0 }
 0x173   : > { %v4340_v58 = vpop.f32.mrf.mxu1  ;;  %1386 = vmatmul.bf16.gmra.mxu2 %v4197_v0 }
 0x174   : > { %5257 = vst [vmem:[#allocation44_spill] sm:$0xff] %v4340_v58  ;;  %1484 = vmatmul.bf16.gmra.mxu0 %v4197_v0  ;;  %v3390_v0 = vld [vmem:[#allocation13 + $0x38] sm:$0xff] }
 0x175   : > { %2368 = vmatpush.bf16.msrb.mxu2 %v3390_v0 }
 0x176   : > { %1538 = vmatmul.bf16.gmra.mxu1 %v4209_v51  ;;  %v4395_v55 = vpop.f32.mrf.mxu2 }
 0x177   : > { %v4410_v46 = vpop.f32.mrf.mxu3 }
 0x178   : > { %5268 = vst [vmem:[#allocation55_spill] sm:$0xff] %v4410_v46 }
 0x179   : > { %v4412_v11 = vpop.f32.mrf.mxu0  ;;  %1440 = vmatmul.bf16.gmra.mxu3 %v4209_v51 }
 0x17b   : > { %v4351_v40 = vpop.f32.mrf.mxu1 }
 0x17c   : > { %5261 = vst [vmem:[#allocation48_spill] sm:$0xff] %v4351_v40  ;;  %v4437_v40 = vperm.slane %v4262_v14, 4 }
 0x17e   : > { %v4408_v2 = vpop.f32.mrf.mxu2  ;;  %v1014_v8 = vadd.f32 %v4369_v53, %v4437_v40 }
 0x17f   : > { %5267 = vst [vmem:[#allocation54_spill] sm:$0xff] %v4408_v2 }
 0x181   : > { %v4422_v33 = vpop.f32.mrf.mxu0 }
 0x183   : > { %v4361_v37 = vpop.f32.mrf.mxu1  ;;  %1391 = vmatmul.bf16.gmra.mxu2 %v4209_v51 }
 0x184   : > { %5262 = vst [vmem:[#allocation49_spill] sm:$0xff] %v4361_v37  ;;  %1489 = vmatmul.bf16.gmra.mxu0 %v4209_v51  ;;  %v3397_v51 = vld [vmem:[#allocation13 + $0x70] sm:$0xff] }
 0x185   : > { %2418 = vmatpush.bf16.msrb.mxu3 %v3397_v51 }
 0x186   : > { %1543 = vmatmul.bf16.gmra.mxu1 %v4216_v22  ;;  %v4418_v41 = vpop.f32.mrf.mxu2 }
 0x187   : > { %5270 = vst [vmem:[#allocation57_spill] sm:$0xff] %v4418_v41 }
 0x189   : > { %v4432_v19 = vpop.f32.mrf.mxu0  ;;  %1445 = vmatmul.bf16.gmra.mxu3 %v4216_v22 }
 0x18b   : > { %v4371_v60 = vpop.f32.mrf.mxu1 }
 0x18c   : > { %5263 = vst [vmem:[#allocation50_spill] sm:$0xff] %v4371_v60  ;;  %v3414_v60 = vld [vmem:[#allocation13 + $0xf8] sm:$0xff] }
 0x18d   : > { %2515 = vmatpush.bf16.msrb.mxu1 %v3414_v60  ;;  %v1012_v60 = vadd.f32 %v4359_v26, %v4437_v40 }
 0x193   : > { %v4381_v32 = vpop.f32.mrf.mxu1  ;;  %1396 = vmatmul.bf16.gmra.mxu2 %v4216_v22 }
 0x194   : > { %5264 = vst [vmem:[#allocation51_spill] sm:$0xff] %v4381_v32  ;;  %v3406_v32 = vld [vmem:[#allocation13 + $0xb8] sm:$0xff]  ;;  %1494 = vmatmul.bf16.gmra.mxu0 %v4216_v22 }
 0x195   : > { %2466 = vmatpush.bf16.msrb.mxu0 %v3406_v32  ;;  %v4444_v32 = vperm.slane %v4440_v24, 4 }
 0x196   : > { %1548 = vmatmul.bf16.gmra.mxu1 %v4228_v34 }
 0x199   : > { %2467 = vmatpush.bf16.msrb.mxu0 %v3405_v54  ;;  %1450 = vmatmul.bf16.gmra.mxu3 %v4228_v34  ;;  %v1017_v54 = vadd.f32 %v4379_v6, %v4437_v40 }
 0x19b   : > { %v4391_v29 = vpop.f32.mrf.mxu1 }
 0x19c   : > { %5265 = vst [vmem:[#allocation52_spill] sm:$0xff] %v4391_v29 }
 0x1a3   : > { %v4401_v44 = vpop.f32.mrf.mxu1  ;;  %1401 = vmatmul.bf16.gmra.mxu2 %v4228_v34 }
 0x1a4   : > { %5266 = vst [vmem:[#allocation53_spill] sm:$0xff] %v4401_v44  ;;  %v4420_v44 = vpop.f32.mrf.mxu3  ;;  %1499 = vmatmul.bf16.gmra.mxu0 %v4228_v34 }
 0x1a5   : > { %5271 = vst [vmem:[#allocation58_spill] sm:$0xff] %v4420_v44 }
 0x1a6   : > { %1553 = vmatmul.bf16.gmra.mxu1 %v4240_v49 }
 0x1a9   : > { %1455 = vmatmul.bf16.gmra.mxu3 %v4240_v49 }
 0x1ab   : > { %v4414_v38 = vpop.f32.mrf.mxu1 }
 0x1ac   : > { %5269 = vst [vmem:[#allocation56_spill] sm:$0xff] %v4414_v38  ;;  %v4428_v38 = vpop.f32.mrf.mxu2  ;;  %v4430_v37 = vpop.f32.mrf.mxu3 }
 0x1ad   : > { %5273 = vst [vmem:[#allocation60_spill] sm:$0xff] %v4428_v38  ;;  %v4452_v38 = vpop.f32.mrf.mxu0 }
 0x1ae   : > { %5274 = vst [vmem:[#allocation61_spill] sm:$0xff] %v4430_v37 }
 0x1b3   : > { %v4424_v29 = vpop.f32.mrf.mxu1  ;;  %1406 = vmatmul.bf16.gmra.mxu2 %v4240_v49 }
 0x1b4   : > { %5272 = vst [vmem:[#allocation59_spill] sm:$0xff] %v4424_v29  ;;  %v3389_v29 = vld [vmem:[#allocation13 + $0x30] sm:$0xff]  ;;  %v4446_v37 = vpop.f32.mrf.mxu2  ;;  %1504 = vmatmul.bf16.gmra.mxu0 %v4240_v49  ;;  %v3386_v49 = vld [vmem:[#allocation13 + $0x18] sm:$0xff] }
 0x1b5   : > { %2369 = vmatpush.bf16.msrb.mxu2 %v3389_v29  ;;  %5276 = vst [vmem:[#allocation63_spill] sm:$0xff] %v4446_v37  ;;  %v3413_v29 = vld [vmem:[#allocation13 + $0xf0] sm:$0xff]  ;;  %v4460_v26 = vpop.f32.mrf.mxu0 }
 0x1b6   : > { %1558 = vmatmul.bf16.gmra.mxu1 %v4252_v62 }
 0x1b7   : > { %2516 = vmatpush.bf16.msrb.mxu1 %v3413_v29 }
 0x1b9   : > { %1460 = vmatmul.bf16.gmra.mxu3 %v4252_v62 }
 0x1bb   : > { %v4434_v0 = vpop.f32.mrf.mxu1 }
 0x1bc   : > { %5275 = vst [vmem:[#allocation62_spill] sm:$0xff] %v4434_v0  ;;  %v4450_v0 = vpop.f32.mrf.mxu3  ;;  %v4456_v51 = vpop.f32.mrf.mxu2 }
 0x1bd   : > { %5277 = vst [vmem:[#allocation64_spill] sm:$0xff] %v4450_v0  ;;  %v4473_v53 = vpop.f32.mrf.mxu0 }
 0x1be   : > { %5278 = vst [vmem:[#allocation65_spill] sm:$0xff] %v4456_v51  ;;  %v3395_v51 = vld [vmem:[#allocation13 + $0x60] sm:$0xff] }
 0x1c3   : > { %v1524_v58 = vpop.f32.mrf.mxu1  ;;  %1411 = vmatmul.bf16.gmra.mxu2 %v4252_v62 }
 0x1c4   : > { %v1525_v44 = vadd.f32 %v1524_v58, %v4444_v32  ;;  %v4458_v37 = vpop.f32.mrf.mxu3  ;;  %1509 = vmatmul.bf16.gmra.mxu0 %v4252_v62 }
 0x1c5   : > { %5279 = vst [vmem:[#allocation66_spill] sm:$0xff] %v4458_v37  ;;  %v3404_v37 = vld [vmem:[#allocation13 + $0xa8] sm:$0xff]  ;;  %v4485_v34 = vpop.f32.mrf.mxu0 }
 0x1c6   : > { %v1564_v41 = vadd.f32 %v1525_v44, %v1012_v60  ;;  %v3388_v44 = vld [vmem:[#allocation13 + $0x28] sm:$0xff]  ;;  %2468 = vmatpush.bf16.msrb.mxu0 %v3404_v37  ;;  %v1022_v37 = vadd.f32 %v4399_v57, %v4437_v40  ;;  %v1024_v57 = vadd.f32 %v4412_v11, %v4437_v40  ;;  %v1027_v11 = vadd.f32 %v4422_v33, %v4437_v40 }
 0x1c7   : > { %v3396_v60 = vld [vmem:[#allocation13 + $0x68] sm:$0xff]  ;;  %2370 = vmatpush.bf16.msrb.mxu2 %v3388_v44 }
 0x1c8   : > { %1725 = vperm.xlu1 %3593, %v1564_v41   ;;  %1582 = vperm.xlu0 %3592, %v1564_v41   ;;  %v4467_v41 = vpop.f32.mrf.mxu2  ;;  %v3412_v44 = vld [vmem:[#allocation13 + $0xe8] sm:$0xff] }
 0x1c9   : > { %2419 = vmatpush.bf16.msrb.mxu3 %v3396_v60  ;;  %5280 = vst [vmem:[#allocation67_spill] sm:$0xff] %v4467_v41  ;;  %2517 = vmatpush.bf16.msrb.mxu1 %v3412_v44 }
 0x1cb   : > { %v1526_v0 = vpop.f32.mrf.mxu1 }
 0x1cc   : > { %v1527_v58 = vadd.f32 %v1526_v0, %v4444_v32  ;;  %v4471_v29 = vpop.f32.mrf.mxu3 }
 0x1cd   : > { %5281 = vst [vmem:[#allocation68_spill] sm:$0xff] %v4471_v29  ;;  %v1019_v29 = vadd.f32 %v4389_v18, %v4437_v40  ;;  %2420 = vmatpush.bf16.msrb.mxu3 %v3395_v51  ;;  %v3411_v51 = vld [vmem:[#allocation13 + $0xe0] sm:$0xff] }
 0x1ce   : > { %v1565_v22 = vadd.f32 %v1527_v58, %v1014_v8  ;;  %2518 = vmatpush.bf16.msrb.mxu1 %v3411_v51 }
 0x1d0   : > { %1729 = vperm.xlu1 %3593, %v1565_v22   ;;  %1587 = vperm.xlu0 %3592, %v1565_v22   ;;  %v5282_v22 = vmov 1   ;;  %v4478_v60 = vpop.f32.mrf.mxu2 }
 0x1d1   : > { %5283 = vst [vmem:[#allocation69_spill] sm:$0xff] %v4478_v60 }
 0x1d3   : > { %v1529_v8 = vpop.f32.mrf.mxu1 }
 0x1d4   : > { %v1530_v0 = vadd.f32 %v1529_v8, %v4444_v32  ;;  %v4480_v41 = vpop.f32.mrf.mxu3 }
 0x1d5   : > { %5284 = vst [vmem:[#allocation70_spill] sm:$0xff] %v4480_v41  ;;  %v3403_v41 = vld [vmem:[#allocation13 + $0xa0] sm:$0xff] }
 0x1d6   : > { %v1566_v58 = vadd.f32 %v1530_v0, %v1017_v54  ;;  %v3387_v0 = vld [vmem:[#allocation13 + $0x20] sm:$0xff]  ;;  %2469 = vmatpush.bf16.msrb.mxu0 %v3403_v41 }
 0x1d7   : > { %2371 = vmatpush.bf16.msrb.mxu2 %v3387_v0 }
 0x1d8   : > { %1592 = vperm.xlu2 %3594, %v1566_v58   ;;  %3595 = vset.pattern.permute.xlu0 %v5282_v22  ;;  %v4492_v44 = vpop.f32.mrf.mxu2 }
 0x1d9   : > { %1733 = vperm.xlu0 %3595, %v1566_v58   ;;  %5285 = vst [vmem:[#allocation71_spill] sm:$0xff] %v4492_v44 }
 0x1db   : > { %v1531_v6 = vpop.f32.mrf.mxu1  ;;  %2372 = vmatpush.bf16.msrb.mxu2 %v3386_v49 }
 0x1dc   : > { %v1532_v8 = vadd.f32 %v1531_v6, %v4444_v32  ;;  %v4494_v6 = vpop.f32.mrf.mxu3 }
 0x1dd   : > { %5286 = vst [vmem:[#allocation72_spill] sm:$0xff] %v4494_v6 }
 0x1de   : > { %v1567_v54 = vadd.f32 %v1532_v8, %v1019_v29  ;;  %v4497_v8 = vpop.f32.mrf.mxu0 }
 0x1e0   : > { %1597 = vperm.xlu2 %3594, %v1567_v54   ;;  %1737 = vperm.xlu1 %3593, %v1567_v54   ;;  %v5287_v54 = vmov 0   ;;  %v4503_v6 = vpop.f32.mrf.mxu2 }
 0x1e1   : > { %5288 = vst [vmem:[#allocation73_spill] sm:$0xff] %v4503_v6 }
 0x1e3   : > { %v1534_v58 = vpop.f32.mrf.mxu1 }
 0x1e4   : > { %v1535_v18 = vadd.f32 %v1534_v58, %v4444_v32 }
 0x1e6   : > { %v1568_v29 = vadd.f32 %v1535_v18, %v1022_v37  ;;  %v3394_v37 = vld [vmem:[#allocation13 + $0x58] sm:$0xff]  ;;  %v4506_v18 = vpop.f32.mrf.mxu3  ;;  %v4510_v41 = vpop.f32.mrf.mxu0 }
 0x1e7   : > { %5289 = vst [vmem:[#allocation74_spill] sm:$0xff] %v4506_v18  ;;  %2421 = vmatpush.bf16.msrb.mxu3 %v3394_v37  ;;  %v1029_v37 = vadd.f32 %v4432_v19, %v4437_v40  ;;  %v1044_v36 = vadd.f32 %v4510_v41, %v4437_v40  ;;  %v4591_v41 = vperm.slane %v4440_v24, 0 }
 0x1e8   : > { %1602 = vperm.xlu2 %3594, %v1568_v29   ;;  %3597 = vset.pattern.permute.xlu1 %v5287_v54  ;;  %v4516_v18 = vpop.f32.mrf.mxu2 }
 0x1e9   : > { %5290 = vst [vmem:[#allocation75_spill] sm:$0xff] %v4516_v18  ;;  %v4637_v30 = vadd.f32 %v4285_v39, %v4591_v41  ;;  %v4661_v31 = vadd.f32 %v4307_v4, %v4591_v41 }
 0x1ea   : > { %5295 = vst [vmem:[#allocation80_spill] sm:$0xff] %v4591_v41 }
 0x1eb   : > { %v1536_v0 = vpop.f32.mrf.mxu1  ;;  %5296 = vst [vmem:[#allocation81_spill] sm:$0xff] %v4661_v31 }
 0x1ec   : > { %v1537_v58 = vadd.f32 %v1536_v0, %v4444_v32 }
 0x1ee   : > { %v1569_v44 = vadd.f32 %v1537_v58, %v1024_v57  ;;  %v3402_v58 = vld [vmem:[#allocation13 + $0x98] sm:$0xff]  ;;  %v4521_v33 = vpop.f32.mrf.mxu0 }
 0x1ef   : > { %2470 = vmatpush.bf16.msrb.mxu0 %v3402_v58 }
 0x1f0   : > { %3596 = vset.pattern.permute.xlu2 %v5282_v22  ;;  %1607 = vperm.xlu1 %3597, %v1569_v44   ;;  %v4530_v58 = vpop.f32.mrf.mxu2 }
 0x1f1   : > { %1745 = vperm.xlu0 %3595, %v1569_v44   ;;  %1741 = vperm.xlu2 %3596, %v1568_v29   ;;  %v4519_v44 = vpop.f32.mrf.mxu3  ;;  %v3410_v29 = vld [vmem:[#allocation13 + $0xd8] sm:$0xff]  ;;  %5292 = vst [vmem:[#allocation77_spill] sm:$0xff] %v4530_v58 }
 0x1f2   : > { %5291 = vst [vmem:[#allocation76_spill] sm:$0xff] %v4519_v44  ;;  %2519 = vmatpush.bf16.msrb.mxu1 %v3410_v29  ;;  %v3401_v44 = vld [vmem:[#allocation13 + $0x90] sm:$0xff] }
 0x1f3   : > { %v1539_v51 = vpop.f32.mrf.mxu1  ;;  %2471 = vmatpush.bf16.msrb.mxu0 %v3401_v44 }
 0x1f4   : > { %v1540_v0 = vadd.f32 %v1539_v51, %v4444_v32  ;;  %v3385_v51 = vld [vmem:[#allocation13 + $0x10] sm:$0xff] }
 0x1f5   : > { %2373 = vmatpush.bf16.msrb.mxu2 %v3385_v51 }
 0x1f6   : > { %v1570_v57 = vadd.f32 %v1540_v0, %v1027_v11  ;;  %v3393_v0 = vld [vmem:[#allocation13 + $0x50] sm:$0xff] }
 0x1f7   : > { %2422 = vmatpush.bf16.msrb.mxu3 %v3393_v0 }
 0x1f8   : > { %1612 = vperm.xlu1 %3597, %v1570_v57   ;;  %v4540_v0 = vpop.f32.mrf.mxu2 }
 0x1f9   : > { %1749 = vperm.xlu0 %3595, %v1570_v57   ;;  %3598 = vset.pattern.permute.xlu2 %v5287_v54  ;;  %v1032_v57 = vadd.f32 %v4452_v38, %v4437_v40  ;;  %v4532_v19 = vpop.f32.mrf.mxu3  ;;  %v1034_v38 = vadd.f32 %v4460_v26, %v4437_v40  ;;  %v1037_v26 = vadd.f32 %v4473_v53, %v4437_v40  ;;  %v3408_v53 = vld [vmem:[#allocation13 + $0xc8] sm:$0xff] }
 0x1fa   : > { %5293 = vst [vmem:[#allocation78_spill] sm:$0xff] %v4532_v19 }
 0x1fb   : > { %v1541_v49 = vpop.f32.mrf.mxu1 }
 0x1fc   : > { %v1542_v62 = vadd.f32 %v1541_v49, %v4444_v32 }
 0x1fe   : > { %v1571_v11 = vadd.f32 %v1542_v62, %v1029_v37  ;;  %v4535_v37 = vpop.f32.mrf.mxu0 }
 0x200   : > { %1617 = vperm.xlu2 %3598, %v1571_v11   ;;  %3599 = vset.pattern.permute.xlu1 %v5282_v22 }
 0x201   : > { %1753 = vperm.xlu1 %3599, %v1571_v11   ;;  %3600 = vset.pattern.permute.xlu0 %v5287_v54  ;;  %v3409_v11 = vld [vmem:[#allocation13 + $0xd0] sm:$0xff]  ;;  %v4542_v19 = vpop.f32.mrf.mxu3 }
 0x202   : > { %2520 = vmatpush.bf16.msrb.mxu1 %v3409_v11  ;;  %v4551_v11 = vpop.f32.mrf.mxu2 }
 0x203   : > { %v1544_v29 = vpop.f32.mrf.mxu1 }
 0x204   : > { %v1545_v49 = vadd.f32 %v1544_v29, %v4444_v32 }
 0x206   : > { %v1572_v62 = vadd.f32 %v1545_v49, %v1032_v57  ;;  %v4544_v58 = vpop.f32.mrf.mxu0  ;;  %v3384_v57 = vld [vmem:[#allocation13 + $0x8] sm:$0xff]  ;;  %2521 = vmatpush.bf16.msrb.mxu1 %v3408_v53 }
 0x207   : > { %v3392_v49 = vld [vmem:[#allocation13 + $0x48] sm:$0xff]  ;;  %2374 = vmatpush.bf16.msrb.mxu2 %v3384_v57 }
 0x208   : > { %1622 = vperm.xlu2 %3598, %v1572_v62   ;;  %2423 = vmatpush.bf16.msrb.mxu3 %v3392_v49  ;;  %v1039_v49 = vadd.f32 %v4485_v34, %v4437_v40  ;;  %v3383_v34 = vld [vmem:[#allocation13] sm:$0xff] }
 0x209   : > { %1757 = vperm.xlu1 %3599, %v1572_v62  }
 0x20b   : > { %v1546_v18 = vpop.f32.mrf.mxu1  ;;  %2375 = vmatpush.bf16.msrb.mxu2 %v3383_v34 }
 0x20c   : > { %v1547_v51 = vadd.f32 %v1546_v18, %v4444_v32  ;;  %2424 = vmatpush.bf16.msrb.mxu3 %v3391_v63 }
 0x20e   : > { %v1573_v29 = vadd.f32 %v1547_v51, %v1034_v38  ;;  %v3400_v38 = vld [vmem:[#allocation13 + $0x88] sm:$0xff]  ;;  %v4553_v51 = vpop.f32.mrf.mxu3 }
 0x20f   : > { %2472 = vmatpush.bf16.msrb.mxu0 %v3400_v38 }
 0x210   : > { %3601 = vset.pattern.permute.xlu2 %v5282_v22  ;;  %1627 = vperm.xlu0 %3600, %v1573_v29  }
 0x211   : > { %1761 = vperm.xlu2 %3601, %v1573_v29   ;;  %3602 = vset.pattern.permute.xlu1 %v5287_v54  ;;  %v4556_v29 = vpop.f32.mrf.mxu0 }
 0x213   : > { %v1549_v18 = vpop.f32.mrf.mxu1  ;;  %2473 = vmatpush.bf16.msrb.mxu0 %v3399_v47  ;;  %v4594_v47 = vperm.slane %v4440_v24, 1 }
 0x214   : > { %v1550_v44 = vadd.f32 %v1549_v18, %v4444_v32 }
 0x216   : > { %v1574_v62 = vadd.f32 %v1550_v44, %v1037_v26  ;;  %v4563_v44 = vpop.f32.mrf.mxu2  ;;  %v4565_v6 = vpop.f32.mrf.mxu3 }
 0x218   : > { %1632 = vperm.xlu1 %3602, %v1574_v62   ;;  %3603 = vset.pattern.permute.xlu0 %v5282_v22 }
 0x219   : > { %1765 = vperm.xlu0 %3603, %v1574_v62   ;;  %3604 = vset.pattern.permute.xlu2 %v5287_v54  ;;  %v1042_v62 = vadd.f32 %v4497_v8, %v4437_v40  ;;  %v4569_v38 = vpop.f32.mrf.mxu0  ;;  %v3407_v8 = vld [vmem:[#allocation13 + $0xc0] sm:$0xff] }
 0x21a   : > { %2522 = vmatpush.bf16.msrb.mxu1 %v3407_v8  ;;  %v4600_v8 = vperm.slane %v4440_v24, 3 }
 0x21b   : > { %v1551_v57 = vpop.f32.mrf.mxu1 }
 0x21c   : > { %v1552_v26 = vadd.f32 %v1551_v57, %v4444_v32  ;;  %v1476_v39 = vadd.f32 %v4544_v58, %v4600_v8 }
 0x21e   : > { %v1575_v18 = vadd.f32 %v1552_v26, %v1039_v49  ;;  %v4573_v49 = vpop.f32.mrf.mxu2 }
 0x220   : > { %1637 = vperm.xlu2 %3604, %v1575_v18   ;;  %3605 = vset.pattern.permute.xlu1 %v5282_v22 }
 0x221   : > { %1769 = vperm.xlu1 %3605, %v1575_v18   ;;  %v4575_v18 = vpop.f32.mrf.mxu3  ;;  %v4580_v17 = vpop.f32.mrf.mxu0 }
 0x223   : > { %v1554_v53 = vpop.f32.mrf.mxu1 }
 0x224   : > { %v1555_v60 = vadd.f32 %v1554_v53, %v4444_v32 }
 0x226   : > { %v1576_v57 = vadd.f32 %v1555_v60, %v1042_v62  ;;  %v4584_v60 = vperm.slane %v4262_v14, 1  ;;  %v1047_v62 = vadd.f32 %v4521_v33, %v4437_v40  ;;  %v4617_v43 = vpop.f32.mrf.mxu2 }
 0x228   : > { %1642 = vperm.xlu2 %3604, %v1576_v57   ;;  %5294 = vst [vmem:[#allocation79_spill] sm:$0xff] %v4584_v60  ;;  %v865_v33 = vadd.f32 %v4218_v23, %v4584_v60  ;;  %v4615_v46 = vadd.f32 %v4234_v42, %v4584_v60  ;;  %v4626_v23 = vperm.slane %v4262_v14, 2  ;;  %v1329_v42 = vadd.f32 %v4274_v20, %v4591_v41 }
 0x229   : > { %3607 = vset.pattern.permute.xlu1 %v5287_v54  ;;  %v4631_v2 = vpop.f32.mrf.mxu0 }
 0x22a   : > { %v914_v4 = vadd.f32 %v4355_v21, %v4626_v23 }
 0x22b   : > { %v1556_v26 = vpop.f32.mrf.mxu1 }
 0x22c   : > { %v1557_v53 = vadd.f32 %v1556_v26, %v4444_v32 }
 0x22e   : > { %v1577_v63 = vadd.f32 %v1557_v53, %v1044_v36  ;;  %v4597_v36 = vperm.slane %v4440_v24, 2  ;;  %v4607_v53 = vadd.f32 %v4222_v27, %v4584_v60  ;;  %v4619_v24 = vpop.f32.mrf.mxu3  ;;  %v4629_v27 = vperm.slane %v4262_v14, 3 }
 0x22f   : > { %v4647_v14 = vadd.f32 %v4288_v45, %v4268_v16  ;;  %v4665_v45 = vadd.f32 %v4300_v61, %v4268_v16 }
 0x230   : > { %3606 = vset.pattern.permute.xlu2 %v5282_v22  ;;  %1647 = vperm.xlu1 %3607, %v1577_v63   ;;  %v1427_v20 = vadd.f32 %v4542_v19, %v4597_v36  ;;  %v4670_v19 = vadd.f32 %v4318_v12, %v4591_v41  ;;  %v963_v58 = vadd.f32 %v4357_v25, %v4629_v27 }
 0x231   : > { %1777 = vperm.xlu0 %3603, %v1577_v63   ;;  %1773 = vperm.xlu2 %3606, %v1576_v57   ;;  %v4611_v63 = vadd.f32 %v4230_v35, %v4584_v60  ;;  %v965_v12 = vadd.f32 %v4367_v48, %v4629_v27  ;;  %v4697_v48 = vadd.f32 %v4385_v9, %v4626_v23 }
 0x232   : > { %v4588_v34 = vpop.permute.xlu2 %1592  ;;  %v924_v9 = vadd.f32 %v4395_v55, %v4626_v23 }
 0x233   : > { %v1559_v26 = vpop.f32.mrf.mxu1 }
 0x234   : > { %v1560_v57 = vadd.f32 %v1559_v26, %v4444_v32  ;;  %v4623_v26 = vadd.f32 %v4242_v50, %v4584_v60  ;;  %v816_v50 = vadd.f32 %v4260_v13, %v4268_v16  ;;  %v4657_v13 = vadd.f32 %v4296_v52, %v4591_v41 }
 0x235   : > { %v4674_v52 = vadd.f32 %v4310_v7, %v4268_v16  ;;  %v4692_v7 = vadd.f32 %v4377_v5, %v4629_v27  ;;  %v1049_v5 = vadd.f32 %v4535_v37, %v4437_v40  ;;  %v1383_v37 = vadd.f32 %v4563_v44, %v4594_v47 }
 0x236   : > { %v1578_v35 = vadd.f32 %v1560_v57, %v1047_v62  ;;  %v1378_v62 = vadd.f32 %v4540_v0, %v4594_v47  ;;  %v4688_v57 = vadd.f32 %v4375_v1, %v4626_v23  ;;  %v4701_v1 = vadd.f32 %v4387_v15, %v4629_v27 }
 0x237   : > { %v1429_v15 = vadd.f32 %v4553_v51, %v4597_v36  ;;  %v1432_v51 = vadd.f32 %v4565_v6, %v4597_v36  ;;  %v4743_v44 = vadd.f32 %v4580_v17, %v4600_v8  ;;  %v1388_v6 = vadd.f32 %v4617_v43, %v4594_v47 }
 0x238   : > { %1652 = vperm.xlu1 %3607, %v1578_v35   ;;  %v1669_v43 = vmul.f32 %v4588_v34, %v4611_v63 }
 0x239   : > { %1781 = vperm.xlu0 %3603, %v1578_v35   ;;  %3608 = vset.pattern.permute.xlu2 %v5287_v54  ;;  %v916_v54 = vadd.f32 %v4365_v28, %v4626_v23 }
 0x23a   : > { %v4680_v61 = vpop.permute.xlu2 %1597  ;;  %v1726_v0 = vpop.permute.xlu1 %1725 }
 0x23b   : > { %v1583_v21 = vpop.permute.xlu0 %1582  ;;  %v1561_v35 = vpop.f32.mrf.mxu1  ;;  %v1788_v25 = vmul.f32 %v1726_v0, %v1329_v42  ;;  %v1789_v41 = vmul.f32 %v1726_v0, %v1378_v62  ;;  %v1790_v16 = vmul.f32 %v1726_v0, %v1427_v20  ;;  %v1791_v3 = vmul.f32 %v1726_v0, %v1476_v39 }
 0x23c   : > { %v1660_v59 = vmul.f32 %v1583_v21, %v816_v50  ;;  %v1661_v28 = vmul.f32 %v1583_v21, %v865_v33  ;;  %v1662_v60 = vmul.f32 %v1583_v21, %v914_v4  ;;  %v1663_v31 = vmul.f32 %v1583_v21, %v963_v58  ;;  %v4706_v33 = vpop.f32.mrf.mxu2  ;;  %v4708_v4 = vpop.f32.mrf.mxu3 }
 0x23d   : > { %v1562_v42 = vadd.f32 %v1561_v35, %v4444_v32  ;;  %v1478_v58 = vadd.f32 %v4556_v29, %v4600_v8 }
 0x23e   : > { %v1852_v62 = vadd.f32 %v1788_v25, %v1660_v59  ;;  %v1853_v20 = vadd.f32 %v1789_v41, %v1661_v28  ;;  %v1854_v39 = vadd.f32 %v1790_v16, %v1662_v60  ;;  %v1855_v50 = vadd.f32 %v1791_v3, %v1663_v31  ;;  %v4717_v59 = vpop.f32.mrf.mxu0 }
 0x23f   : > { %v1579_v40 = vadd.f32 %v1562_v42, %v1049_v5  ;;  %v973_v3 = vadd.f32 %v4397_v56, %v4629_v27  ;;  %v1380_v16 = vadd.f32 %v4551_v11, %v4594_v47  ;;  %v4735_v11 = vadd.f32 %v4573_v49, %v4594_v47 }
 0x240   : > { %3609 = vset.pattern.permute.xlu1 %v5282_v22  ;;  %v4723_v32 = vpack.c.bf16 %v1853_v20, %v1852_v62  ;;  %v4725_v55 = vpack.c.bf16 %v1855_v50, %v1854_v39  ;;  %v1481_v22 = vadd.f32 %v4569_v38, %v4600_v8  ;;  %v4739_v60 = vadd.f32 %v4575_v18, %v4597_v36 }
 0x241   : > { %1657 = vperm.xlu2 %3608, %v1579_v40   ;;  %1785 = vperm.xlu1 %3609, %v1579_v40   ;;  %v1668_v25 = vmul.f32 %v4588_v34, %v4647_v14  ;;  %v1437_v28 = vadd.f32 %v4619_v24, %v4597_v36  ;;  %v1671_v14 = vmul.f32 %v4588_v34, %v4692_v7 }
 0x242   : > { %v1603_v29 = vpop.permute.xlu2 %1602  ;;  %v1730_v56 = vpop.permute.xlu1 %1729  ;;  %2596 = vst [vmem:[%s4747_s4] sm:$0xff] %v4723_v32 }
 0x243   : > { %v1588_v38 = vpop.permute.xlu0 %1587  ;;  %2597 = vst [vmem:[%s4747_s4 + $0x8] sm:$0xff] %v4725_v55  ;;  %v1792_v49 = vmul.f32 %v1730_v56, %v4637_v30  ;;  %v1793_v18 = vmul.f32 %v1730_v56, %v1380_v16  ;;  %v1794_v41 = vmul.f32 %v1730_v56, %v1429_v15  ;;  %v1795_v31 = vmul.f32 %v1730_v56, %v1478_v58 }
 0x244   : > { %v1664_v17 = vmul.f32 %v1588_v38, %v4643_v10  ;;  %v1665_v0 = vmul.f32 %v1588_v38, %v4607_v53  ;;  %v1666_v21 = vmul.f32 %v1588_v38, %v916_v54  ;;  %v1667_v35 = vmul.f32 %v1588_v38, %v965_v12  ;;  %v4772_v39 = vpop.f32.mrf.mxu2  ;;  %v4774_v50 = vpop.f32.mrf.mxu3 }
 0x245   : > { %v1486_v30 = vadd.f32 %v4631_v2, %v4600_v8  ;;  %v1670_v53 = vmul.f32 %v4588_v34, %v4688_v57  ;;  %v1676_v54 = vmul.f32 %v1603_v29, %v4674_v52  ;;  %v1677_v63 = vmul.f32 %v1603_v29, %v4623_v26 }
 0x246   : > { %v1856_v5 = vadd.f32 %v1792_v49, %v1664_v17  ;;  %v1857_v42 = vadd.f32 %v1793_v18, %v1665_v0  ;;  %v1858_v62 = vadd.f32 %v1794_v41, %v1666_v21  ;;  %v1859_v10 = vadd.f32 %v1795_v31, %v1667_v35  ;;  %v4780_v52 = vpop.f32.mrf.mxu0 }
 0x247   : > { %v1678_v12 = vmul.f32 %v1603_v29, %v924_v9  ;;  %v1679_v24 = vmul.f32 %v1603_v29, %v973_v3  ;;  %v2048_v15 = vunpack.c.l.b16 %v4723_v32  ;;  %v2049_v57 = vunpack.c.h.b16 %v4723_v32 }
 0x248   : > { %v1918_v20 = vpack.c.bf16 %v1857_v42, %v1856_v5  ;;  %v1919_v2 = vpack.c.bf16 %v1859_v10, %v1858_v62  ;;  %v2050_v58 = vunpack.c.l.b16 %v4725_v55  ;;  %v2051_v34 = vunpack.c.h.b16 %v4725_v55 }
 0x24a   : > { %2598 = vst [vmem:[%s4747_s4 + $0x10] sm:$0xff] %v1918_v20  ;;  %v2052_v9 = vunpack.c.l.b16 %v1918_v20  ;;  %v2053_v40 = vunpack.c.h.b16 %v1918_v20  ;;  %v2054_v3 = vunpack.c.l.b16 %v1919_v2  ;;  %v2055_v16 = vunpack.c.h.b16 %v1919_v2 }
 0x24b   : > { %v1742_v26 = vpop.permute.xlu2 %1741  ;;  %v1734_v7 = vpop.permute.xlu0 %1733  ;;  %2599 = vst [vmem:[%s4747_s4 + $0x18] sm:$0xff] %v1919_v2 }
 0x24c   : > { %v1804_v29 = vmul.f32 %v1742_v26, %v4670_v19  ;;  %v1805_v56 = vmul.f32 %v1742_v26, %v1388_v6  ;;  %v1806_v38 = vmul.f32 %v1742_v26, %v1437_v28  ;;  %v1807_v49 = vmul.f32 %v1742_v26, %v1486_v30 }
 0x24d   : > { %v1796_v32 = vmul.f32 %v1734_v7, %v4657_v13  ;;  %v1797_v18 = vmul.f32 %v1734_v7, %v1383_v37  ;;  %v1798_v41 = vmul.f32 %v1734_v7, %v1432_v51  ;;  %v1799_v55 = vmul.f32 %v1734_v7, %v1481_v22 }
 0x24e   : > { %v1868_v31 = vadd.f32 %v1804_v29, %v1676_v54  ;;  %v1869_v17 = vadd.f32 %v1805_v56, %v1677_v63  ;;  %v1870_v0 = vadd.f32 %v1806_v38, %v1678_v12  ;;  %v1871_v21 = vadd.f32 %v1807_v49, %v1679_v24  ;;  %v4803_v63 = vpop.f32.mrf.mxu2  ;;  %v4811_v20 = vpop.f32.mrf.mxu0 }
 0x24f   : > { %v1860_v35 = vadd.f32 %v1796_v32, %v1668_v25  ;;  %v1861_v5 = vadd.f32 %v1797_v18, %v1669_v43  ;;  %v1862_v42 = vadd.f32 %v1798_v41, %v1670_v53  ;;  %v1863_v62 = vadd.f32 %v1799_v55, %v1671_v14  ;;  %v5297_v14 = vld [vmem:[#allocation81_spill] sm:$0xff]  ;;  %v5298_v41 = vld [vmem:[#allocation79_spill] sm:$0xff] }
 0x250   : > { %v4786_v10 = vpack.c.bf16 %v1869_v17, %v1868_v31  ;;  %v4788_v19 = vpack.c.bf16 %v1871_v21, %v1870_v0  ;;  %v2112_v6 = vpack.c.b16 %v2052_v9, %v2048_v15  ;;  %v2113_v28 = vpack.c.b16 %v2053_v40, %v2049_v57  ;;  %v5299_v55 = vld [vmem:[#allocation23_spill] sm:$0xff]  ;;  %v5300_v17 = vld [vmem:[#allocation24_spill] sm:$0xff]  ;;  %v5301_v21 = vld [vmem:[#allocation25_spill] sm:$0xff] }
 0x251   : > { %v1920_v13 = vpack.c.bf16 %v1861_v5, %v1860_v35  ;;  %v1921_v37 = vpack.c.bf16 %v1863_v62, %v1862_v42  ;;  %v2114_v51 = vpack.c.b16 %v2054_v3, %v2050_v58  ;;  %v2115_v22 = vpack.c.b16 %v2055_v16, %v2051_v34  ;;  %v5302_v42 = vld [vmem:[#allocation27_spill] sm:$0xff]  ;;  %v5303_v62 = vld [vmem:[#allocation37_spill] sm:$0xff] }
 0x252   : > { %v1672_v30 = vmul.f32 %v4680_v61, %v4665_v45  ;;  %v1673_v25 = vmul.f32 %v4680_v61, %v4615_v46  ;;  %v1674_v43 = vmul.f32 %v4680_v61, %v4697_v48  ;;  %2604 = vst [vmem:[%s4747_s4 + $0x40] sm:$0xff] %v4786_v10  ;;  %2376 = vmatmul.bf16.vlgmr.msrb.gmra.mxu2 %v2112_v6  ;;  %v1738_v53 = vpop.permute.xlu1 %1737  ;;  %v4805_v48 = vpop.f32.mrf.mxu3 }
 0x253   : > { %2425 = vmatmul.bf16.vlgmr.msrb.gmra.mxu3 %v2113_v28  ;;  %2605 = vst [vmem:[%s4747_s4 + $0x48] sm:$0xff] %v4788_v19  ;;  %2474 = vmatmul.bf16.vlgmr.msrb.gmra.mxu0 %v2114_v51  ;;  %v1800_v54 = vmul.f32 %v1738_v53, %v5297_v14  ;;  %v1801_v45 = vmul.f32 %v1738_v53, %v4735_v11  ;;  %v2056_v34 = vunpack.c.l.b16 %v1920_v13  ;;  %v2057_v7 = vunpack.c.h.b16 %v1920_v13  ;;  %v5304_v28 = vld [vmem:[#allocation54_spill] sm:$0xff] }
 0x254   : > { %2523 = vmatmul.bf16.vlgmr.msrb.gmra.mxu1 %v2115_v22  ;;  %v1802_v46 = vmul.f32 %v1738_v53, %v4739_v60  ;;  %v1675_v12 = vmul.f32 %v4680_v61, %v4701_v1  ;;  %2600 = vst [vmem:[%s4747_s4 + $0x20] sm:$0xff] %v1920_v13  ;;  %v1803_v24 = vmul.f32 %v1738_v53, %v4743_v44  ;;  %v2058_v61 = vunpack.c.l.b16 %v1921_v37  ;;  %v5305_v22 = vld [vmem:[#allocation80_spill] sm:$0xff] }
 0x255   : > { %2601 = vst [vmem:[%s4747_s4 + $0x28] sm:$0xff] %v1921_v37  ;;  %v1864_v2 = vadd.f32 %v1800_v54, %v1672_v30  ;;  %v1865_v15 = vadd.f32 %v1801_v45, %v1673_v25  ;;  %v2059_v40 = vunpack.c.h.b16 %v1921_v37  ;;  %v877_v31 = vadd.f32 %v5299_v55, %v5298_v41  ;;  %v5306_v30 = vld [vmem:[#allocation40_spill] sm:$0xff]  ;;  %v5308_v54 = vld [vmem:[#allocation26_spill] sm:$0xff] }
 0x256   : > { %v1866_v57 = vadd.f32 %v1802_v46, %v1674_v43  ;;  %v1867_v11 = vadd.f32 %v1803_v24, %v1675_v12  ;;  %v4816_v38 = vpop.f32.mrf.mxu2  ;;  %v4822_v18 = vpop.f32.mrf.mxu0  ;;  %v880_v0 = vadd.f32 %v5300_v17, %v5298_v41  ;;  %v4830_v35 = vadd.f32 %v5301_v21, %v5298_v41  ;;  %v5307_v43 = vld [vmem:[#allocation55_spill] sm:$0xff] }
 0x257   : > { %v1922_v58 = vpack.c.bf16 %v1865_v15, %v1864_v2  ;;  %v1439_v5 = vadd.f32 %v4708_v4, %v4597_v36  ;;  %v828_v6 = vadd.f32 %v5303_v62, %v5302_v42  ;;  %v926_v13 = vadd.f32 %v5304_v28, %v4626_v23 }
 0x258   : > { %v1923_v60 = vpack.c.bf16 %v1867_v11, %v1866_v57  ;;  %v1488_v37 = vadd.f32 %v4717_v59, %v4600_v8  ;;  %v1341_v25 = vadd.f32 %v5306_v30, %v5305_v22  ;;  %v975_v53 = vadd.f32 %v5307_v43, %v4629_v27  ;;  %v5309_v11 = vld [vmem:[#allocation29_spill] sm:$0xff] }
 0x259   : > { %2602 = vst [vmem:[%s4747_s4 + $0x30] sm:$0xff] %v1922_v58  ;;  %v2060_v26 = vunpack.c.l.b16 %v1922_v58  ;;  %v2061_v9 = vunpack.c.h.b16 %v1922_v58  ;;  %v1390_v4 = vadd.f32 %v4706_v33, %v4594_v47  ;;  %v4848_v45 = vadd.f32 %v5308_v54, %v5298_v41  ;;  %v5310_v33 = vld [vmem:[#allocation31_spill] sm:$0xff] }
 0x25a   : > { %2603 = vst [vmem:[%s4747_s4 + $0x38] sm:$0xff] %v1923_v60  ;;  %v2062_v1 = vunpack.c.l.b16 %v1923_v60  ;;  %v2063_v3 = vunpack.c.h.b16 %v1923_v60  ;;  %v4818_v49 = vpop.f32.mrf.mxu3  ;;  %v4820_v32 = vpop.permute.xlu2 %1617  ;;  %v4852_v58 = vadd.f32 %v5309_v11, %v5298_v41  ;;  %v4856_v60 = vadd.f32 %v5310_v33, %v5298_v41 }
 0x25b   : > { %v2116_v44 = vpack.c.b16 %v2060_v26, %v2056_v34  ;;  %v2117_v16 = vpack.c.b16 %v2061_v9, %v2057_v7  ;;  %v5311_v34 = vld [vmem:[#allocation33_spill] sm:$0xff]  ;;  %v5312_v9 = vld [vmem:[#allocation35_spill] sm:$0xff]  ;;  %v1491_v55 = vadd.f32 %v4780_v52, %v4600_v8  ;;  %v2064_v11 = vunpack.c.l.b16 %v4786_v10 }
 0x25c   : > { %v2118_v29 = vpack.c.b16 %v2062_v1, %v2058_v61  ;;  %v2119_v56 = vpack.c.b16 %v2063_v3, %v2059_v40  ;;  %v4860_v26 = vadd.f32 %v5311_v34, %v5298_v41  ;;  %v4864_v61 = vadd.f32 %v5312_v9, %v5298_v41  ;;  %v5317_v52 = vld [vmem:[#allocation45_spill] sm:$0xff] }
 0x25d   : > { %v833_v30 = vadd.f32 %v5317_v52, %v5302_v42  ;;  %v2066_v33 = vunpack.c.l.b16 %v4788_v19  ;;  %v2067_v34 = vunpack.c.h.b16 %v4788_v19  ;;  %v5320_v52 = vld [vmem:[#allocation49_spill] sm:$0xff] }
 0x25e   : > { %v4878_v21 = vpop.f32.mrf.mxu0 }
 0x262   : > { %2381 = vmatmul.bf16.gmra.mxu2 %v2116_v44  ;;  %v1608_v51 = vpop.permute.xlu1 %1607  ;;  %v4866_v44 = vpop.f32.mrf.mxu2 }
 0x263   : > { %2430 = vmatmul.bf16.gmra.mxu3 %v2117_v16  ;;  %2479 = vmatmul.bf16.gmra.mxu0 %v2118_v29  ;;  %v1746_v14 = vpop.permute.xlu0 %1745  ;;  %v1680_v59 = vmul.f32 %v1608_v51, %v828_v6  ;;  %v1681_v46 = vmul.f32 %v1608_v51, %v877_v31  ;;  %v1682_v12 = vmul.f32 %v1608_v51, %v926_v13  ;;  %v4868_v16 = vpop.f32.mrf.mxu3  ;;  %v5314_v6 = vld [vmem:[#allocation57_spill] sm:$0xff] }
 0x264   : > { %2528 = vmatmul.bf16.gmra.mxu1 %v2119_v56  ;;  %v1683_v24 = vmul.f32 %v1608_v51, %v975_v53  ;;  %v1808_v2 = vmul.f32 %v1746_v14, %v1341_v25  ;;  %v1809_v15 = vmul.f32 %v1746_v14, %v1390_v4  ;;  %v1810_v57 = vmul.f32 %v1746_v14, %v1439_v5  ;;  %v4876_v31 = vpop.permute.xlu2 %1622  ;;  %v5313_v5 = vld [vmem:[#allocation41_spill] sm:$0xff]  ;;  %v5318_v25 = vld [vmem:[#allocation60_spill] sm:$0xff] }
 0x265   : > { %v1811_v7 = vmul.f32 %v1746_v14, %v1488_v37  ;;  %v1393_v29 = vadd.f32 %v4772_v39, %v4594_v47  ;;  %v1442_v56 = vadd.f32 %v4774_v50, %v4597_v36  ;;  %v831_v62 = vadd.f32 %v5313_v5, %v5302_v42  ;;  %v5315_v39 = vld [vmem:[#allocation58_spill] sm:$0xff]  ;;  %v5316_v50 = vld [vmem:[#allocation44_spill] sm:$0xff] }
 0x266   : > { %v1872_v1 = vadd.f32 %v1808_v2, %v1680_v59  ;;  %v1873_v40 = vadd.f32 %v1809_v15, %v1681_v46  ;;  %v1874_v3 = vadd.f32 %v1810_v57, %v1682_v12  ;;  %v929_v28 = vadd.f32 %v5314_v6, %v4626_v23  ;;  %v4910_v6 = vpop.f32.mrf.mxu0 }
 0x267   : > { %v1875_v17 = vadd.f32 %v1811_v7, %v1683_v24  ;;  %v978_v13 = vadd.f32 %v5315_v39, %v4629_v27  ;;  %v1344_v51 = vadd.f32 %v5316_v50, %v5305_v22  ;;  %v931_v43 = vadd.f32 %v5318_v25, %v4626_v23  ;;  %v5319_v50 = vld [vmem:[#allocation48_spill] sm:$0xff]  ;;  %v5321_v25 = vld [vmem:[#allocation61_spill] sm:$0xff] }
 0x268   : > { %v1926_v37 = vpack.c.bf16 %v1873_v40, %v1872_v1  ;;  %v2065_v42 = vunpack.c.h.b16 %v4786_v10  ;;  %v1444_v10 = vadd.f32 %v4805_v48, %v4597_v36  ;;  %v1349_v48 = vadd.f32 %v5320_v52, %v5305_v22 }
 0x269   : > { %v1927_v53 = vpack.c.bf16 %v1875_v17, %v1874_v3 }
 0x26a   : > { %v1613_v4 = vpop.permute.xlu1 %1612  ;;  %2606 = vst [vmem:[%s4747_s4 + $0x50] sm:$0xff] %v1926_v37  ;;  %v2068_v40 = vunpack.c.l.b16 %v1926_v37  ;;  %v2069_v3 = vunpack.c.h.b16 %v1926_v37 }
 0x26b   : > { %v1684_v14 = vmul.f32 %v1613_v4, %v831_v62  ;;  %v1685_v54 = vmul.f32 %v1613_v4, %v880_v0  ;;  %v1686_v59 = vmul.f32 %v1613_v4, %v929_v28  ;;  %v1687_v46 = vmul.f32 %v1613_v4, %v978_v13  ;;  %v1750_v12 = vpop.permute.xlu0 %1749  ;;  %2607 = vst [vmem:[%s4747_s4 + $0x58] sm:$0xff] %v1927_v53 }
 0x26c   : > { %v1812_v24 = vmul.f32 %v1750_v12, %v1344_v51  ;;  %v1813_v2 = vmul.f32 %v1750_v12, %v1393_v29  ;;  %v1814_v15 = vmul.f32 %v1750_v12, %v1442_v56  ;;  %v1815_v57 = vmul.f32 %v1750_v12, %v1491_v55  ;;  %v4898_v29 = vpop.f32.mrf.mxu2  ;;  %v4900_v56 = vpop.f32.mrf.mxu3 }
 0x26d   : > { %v2070_v17 = vunpack.c.l.b16 %v1927_v53  ;;  %v2071_v5 = vunpack.c.h.b16 %v1927_v53  ;;  %v1493_v55 = vadd.f32 %v4811_v20, %v4600_v8  ;;  %v2120_v28 = vpack.c.b16 %v2068_v40, %v2064_v11  ;;  %v4922_v4 = vpop.permute.xlu2 %1761  ;;  %v5324_v11 = vld [vmem:[#allocation52_spill] sm:$0xff] }
 0x26e   : > { %v1876_v7 = vadd.f32 %v1812_v24, %v1684_v14  ;;  %v1877_v9 = vadd.f32 %v1813_v2, %v1685_v54  ;;  %v1878_v1 = vadd.f32 %v1814_v15, %v1686_v59  ;;  %v1879_v0 = vadd.f32 %v1815_v57, %v1687_v46  ;;  %v5322_v2 = vld [vmem:[#allocation50_spill] sm:$0xff] }
 0x26f   : > { %v2121_v39 = vpack.c.b16 %v2069_v3, %v2065_v42  ;;  %v2122_v13 = vpack.c.b16 %v2070_v17, %v2066_v33  ;;  %v2123_v37 = vpack.c.b16 %v2071_v5, %v2067_v34  ;;  %v1346_v51 = vadd.f32 %v5319_v50, %v5305_v22  ;;  %v5327_v3 = vld [vmem:[#allocation64_spill] sm:$0xff] }
 0x270   : > { %v4906_v19 = vpack.c.bf16 %v1877_v9, %v1876_v7  ;;  %v4908_v62 = vpack.c.bf16 %v1879_v0, %v1878_v1  ;;  %v980_v20 = vadd.f32 %v5321_v25, %v4629_v27  ;;  %v1395_v53 = vadd.f32 %v4803_v63, %v4594_v47  ;;  %v5325_v9 = vld [vmem:[#allocation53_spill] sm:$0xff]  ;;  %v5326_v0 = vld [vmem:[#allocation63_spill] sm:$0xff] }
 0x271   : > { %v1688_v14 = vmul.f32 %v4820_v32, %v833_v30  ;;  %v1689_v54 = vmul.f32 %v4820_v32, %v4830_v35  ;;  %v1690_v59 = vmul.f32 %v4820_v32, %v931_v43  ;;  %v4932_v15 = vadd.f32 %v5322_v2, %v5305_v22  ;;  %v5323_v30 = vld [vmem:[#allocation51_spill] sm:$0xff] }
 0x272   : > { %2608 = vst [vmem:[%s4747_s4 + $0x60] sm:$0xff] %v4906_v19  ;;  %2386 = vmatmul.bf16.gmra.mxu2 %v2120_v28  ;;  %v4936_v57 = vadd.f32 %v5323_v30, %v5305_v22  ;;  %v1691_v35 = vmul.f32 %v4820_v32, %v980_v20  ;;  %v4941_v42 = vadd.f32 %v5324_v11, %v5305_v22 }
 0x273   : > { %2609 = vst [vmem:[%s4747_s4 + $0x68] sm:$0xff] %v4908_v62  ;;  %2435 = vmatmul.bf16.gmra.mxu3 %v2121_v39  ;;  %v1754_v46 = vpop.permute.xlu1 %1753  ;;  %2484 = vmatmul.bf16.gmra.mxu0 %v2122_v13  ;;  %v4945_v1 = vadd.f32 %v5325_v9, %v5305_v22  ;;  %v934_v40 = vadd.f32 %v5326_v0, %v4626_v23  ;;  %v5328_v39 = vld [vmem:[#allocation65_spill] sm:$0xff] }
 0x274   : > { %2533 = vmatmul.bf16.gmra.mxu1 %v2123_v37  ;;  %v1816_v12 = vmul.f32 %v1754_v46, %v1346_v51  ;;  %v1817_v63 = vmul.f32 %v1754_v46, %v1395_v53  ;;  %v1818_v24 = vmul.f32 %v1754_v46, %v1444_v10  ;;  %v1819_v43 = vmul.f32 %v1754_v46, %v1493_v55  ;;  %v5329_v37 = vld [vmem:[#allocation28_spill] sm:$0xff]  ;;  %v1453_v25 = vpop.f32.mrf.mxu3 }
 0x275   : > { %v983_v17 = vadd.f32 %v5327_v3, %v4629_v27  ;;  %v1398_v5 = vadd.f32 %v4816_v38, %v4594_v47  ;;  %v1447_v10 = vadd.f32 %v4818_v49, %v4597_v36  ;;  %v1496_v55 = vadd.f32 %v4822_v18, %v4600_v8  ;;  %v4965_v38 = vpop.f32.mrf.mxu2 }
 0x276   : > { %v1880_v33 = vadd.f32 %v1816_v12, %v1688_v14  ;;  %v1881_v34 = vadd.f32 %v1817_v63, %v1689_v54  ;;  %v1882_v7 = vadd.f32 %v1818_v24, %v1690_v59  ;;  %v1883_v32 = vadd.f32 %v1819_v43, %v1691_v35  ;;  %v1502_v54 = vpop.f32.mrf.mxu0 }
 0x277   : > { %v4959_v13 = vadd.f32 %v5328_v39, %v4626_v23  ;;  %v1692_v50 = vmul.f32 %v4876_v31, %v5329_v37  ;;  %v1693_v51 = vmul.f32 %v4876_v31, %v4848_v45  ;;  %v1694_v49 = vmul.f32 %v4876_v31, %v934_v40  ;;  %v5330_v40 = vld [vmem:[#allocation66_spill] sm:$0xff]  ;;  %v5333_v39 = vld [vmem:[#allocation69_spill] sm:$0xff] }
 0x278   : > { %v1930_v28 = vpack.c.bf16 %v1881_v34, %v1880_v33  ;;  %v1931_v52 = vpack.c.bf16 %v1883_v32, %v1882_v7  ;;  %v1695_v20 = vmul.f32 %v4876_v31, %v983_v17  ;;  %v2072_v46 = vunpack.c.l.b16 %v4906_v19  ;;  %v5332_v32 = vld [vmem:[#allocation68_spill] sm:$0xff] }
 0x279   : > { %v2073_v45 = vunpack.c.h.b16 %v4906_v19  ;;  %v2074_v12 = vunpack.c.l.b16 %v4908_v62  ;;  %v2075_v63 = vunpack.c.h.b16 %v4908_v62  ;;  %v985_v3 = vadd.f32 %v5330_v40, %v4629_v27  ;;  %v5331_v19 = vld [vmem:[#allocation67_spill] sm:$0xff] }
 0x27a   : > { %2610 = vst [vmem:[%s4747_s4 + $0x70] sm:$0xff] %v1930_v28  ;;  %v4970_v18 = vpop.permute.xlu2 %1637  ;;  %v2076_v53 = vunpack.c.l.b16 %v1930_v28  ;;  %v2077_v14 = vunpack.c.h.b16 %v1930_v28  ;;  %v2078_v11 = vunpack.c.l.b16 %v1931_v52  ;;  %v2079_v33 = vunpack.c.h.b16 %v1931_v52 }
 0x27b   : > { %2611 = vst [vmem:[%s4747_s4 + $0x78] sm:$0xff] %v1931_v52  ;;  %v1758_v59 = vpop.permute.xlu1 %1757  ;;  %v939_v17 = vadd.f32 %v5331_v19, %v4626_v23  ;;  %v4991_v37 = vadd.f32 %v5333_v39, %v4626_v23  ;;  %v1449_v52 = vadd.f32 %v4868_v16, %v4597_v36  ;;  %v1824_v16 = vmul.f32 %v4922_v4, %v4932_v15 }
 0x27c   : > { %v1820_v24 = vmul.f32 %v1758_v59, %v1349_v48  ;;  %v1821_v2 = vmul.f32 %v1758_v59, %v1398_v5  ;;  %v1822_v30 = vmul.f32 %v1758_v59, %v1447_v10  ;;  %v1823_v31 = vmul.f32 %v1758_v59, %v1496_v55  ;;  %v1456_v15 = vpop.f32.mrf.mxu3 }
 0x27d   : > { %v2124_v35 = vpack.c.b16 %v2076_v53, %v2072_v46  ;;  %v2125_v43 = vpack.c.b16 %v2077_v14, %v2073_v45  ;;  %v2126_v62 = vpack.c.b16 %v2078_v11, %v2074_v12  ;;  %v2127_v48 = vpack.c.b16 %v2079_v33, %v2075_v63  ;;  %v5336_v53 = vld [vmem:[#allocation72_spill] sm:$0xff] }
 0x27e   : > { %v1884_v34 = vadd.f32 %v1820_v24, %v1692_v50  ;;  %v1885_v7 = vadd.f32 %v1821_v2, %v1693_v51  ;;  %v1886_v9 = vadd.f32 %v1822_v30, %v1694_v49  ;;  %v1887_v0 = vadd.f32 %v1823_v31, %v1695_v20  ;;  %v5334_v50 = vld [vmem:[#allocation70_spill] sm:$0xff]  ;;  %v1505_v31 = vpop.f32.mrf.mxu0 }
 0x27f   : > { %v988_v5 = vadd.f32 %v5332_v32, %v4629_v27  ;;  %v1400_v10 = vadd.f32 %v4866_v44, %v4594_v47  ;;  %v4995_v51 = vadd.f32 %v5334_v50, %v4629_v27  ;;  %v1498_v49 = vadd.f32 %v4878_v21, %v4600_v8  ;;  %v5335_v44 = vld [vmem:[#allocation71_spill] sm:$0xff]  ;;  %v5337_v24 = vld [vmem:[#allocation30_spill] sm:$0xff] }
 0x280   : > { %v4985_v55 = vpack.c.bf16 %v1885_v7, %v1884_v34  ;;  %v4987_v28 = vpack.c.bf16 %v1887_v0, %v1886_v9  ;;  %v944_v20 = vadd.f32 %v5335_v44, %v4626_v23  ;;  %v993_v14 = vadd.f32 %v5336_v53, %v4629_v27  ;;  %v5339_v53 = vld [vmem:[#allocation32_spill] sm:$0xff] }
 0x281   : > { %v1403_v59 = vadd.f32 %v4898_v29, %v4594_v47  ;;  %v1452_v46 = vadd.f32 %v4900_v56, %v4597_v36  ;;  %v1501_v21 = vadd.f32 %v4910_v6, %v4600_v8  ;;  %v5018_v63 = vadd.f32 %v1453_v25, %v4597_v36  ;;  %v1407_v29 = vpop.f32.mrf.mxu2 }
 0x282   : > { %2612 = vst [vmem:[%s4747_s4 + $0x80] sm:$0xff] %v4985_v55  ;;  %v1643_v45 = vpop.permute.xlu2 %1642  ;;  %v1628_v12 = vpop.permute.xlu0 %1627  ;;  %2391 = vmatmul.bf16.gmra.mxu2 %v2124_v35  ;;  %v1825_v56 = vmul.f32 %v4922_v4, %v1400_v10  ;;  %v1826_v6 = vmul.f32 %v4922_v4, %v1449_v52  ;;  %v1827_v11 = vmul.f32 %v4922_v4, %v1498_v49  ;;  %v2080_v4 = vunpack.c.l.b16 %v4985_v55 }
 0x283   : > { %2613 = vst [vmem:[%s4747_s4 + $0x88] sm:$0xff] %v4987_v28  ;;  %2440 = vmatmul.bf16.gmra.mxu3 %v2125_v43  ;;  %2489 = vmatmul.bf16.gmra.mxu0 %v2126_v62  ;;  %v1696_v2 = vmul.f32 %v1628_v12, %v5337_v24  ;;  %v1697_v30 = vmul.f32 %v1628_v12, %v4852_v58  ;;  %v2083_v10 = vunpack.c.h.b16 %v4987_v28 }
 0x284   : > { %2538 = vmatmul.bf16.gmra.mxu1 %v2127_v48  ;;  %v1698_v35 = vmul.f32 %v1628_v12, %v4959_v13  ;;  %v1699_v43 = vmul.f32 %v1628_v12, %v985_v3  ;;  %v5027_v25 = vadd.f32 %v1502_v54, %v4600_v8  ;;  %v1408_v7 = vadd.f32 %v1407_v29, %v4594_v47  ;;  %v5338_v3 = vld [vmem:[#allocation36_spill] sm:$0xff] }
 0x285   : > { %v1888_v33 = vadd.f32 %v1824_v16, %v1696_v2  ;;  %v1889_v34 = vadd.f32 %v1825_v56, %v1697_v30  ;;  %v1457_v58 = vadd.f32 %v1456_v15, %v4597_v36  ;;  %v1506_v40 = vadd.f32 %v1505_v31, %v4600_v8 }
 0x286   : > { %v1890_v9 = vadd.f32 %v1826_v6, %v1698_v35  ;;  %v1891_v0 = vadd.f32 %v1827_v11, %v1699_v43  ;;  %v2081_v13 = vunpack.c.h.b16 %v4985_v55  ;;  %v2082_v54 = vunpack.c.l.b16 %v4987_v28 }
 0x287   : > { %v1934_v19 = vpack.c.bf16 %v1889_v34, %v1888_v33  ;;  %v1708_v62 = vmul.f32 %v1643_v45, %v5338_v3  ;;  %v1709_v48 = vmul.f32 %v1643_v45, %v4864_v61  ;;  %v1710_v39 = vmul.f32 %v1643_v45, %v944_v20 }
 0x288   : > { %v1935_v32 = vpack.c.bf16 %v1891_v0, %v1890_v9  ;;  %v1711_v50 = vmul.f32 %v1643_v45, %v993_v14  ;;  %v5340_v9 = vld [vmem:[#allocation34_spill] sm:$0xff] }
 0x289   : > { %2614 = vst [vmem:[%s4747_s4 + $0x90] sm:$0xff] %v1934_v19  ;;  %v2084_v49 = vunpack.c.l.b16 %v1934_v19  ;;  %v2085_v44 = vunpack.c.h.b16 %v1934_v19  ;;  %v1704_v0 = vmul.f32 %v4970_v18, %v5340_v9  ;;  %v1405_v19 = vadd.f32 %v4965_v38, %v4594_v47 }
 0x28a   : > { %v1633_v52 = vpop.permute.xlu1 %1632  ;;  %2615 = vst [vmem:[%s4747_s4 + $0x98] sm:$0xff] %v1935_v32 }
 0x28b   : > { %v1700_v12 = vmul.f32 %v1633_v52, %v5339_v53  ;;  %v1701_v55 = vmul.f32 %v1633_v52, %v4856_v60  ;;  %v1702_v16 = vmul.f32 %v1633_v52, %v939_v17  ;;  %v1703_v29 = vmul.f32 %v1633_v52, %v988_v5  ;;  %v1774_v56 = vpop.permute.xlu2 %1773  ;;  %v1766_v24 = vpop.permute.xlu0 %1765 }
 0x28c   : > { %v1836_v61 = vmul.f32 %v1774_v56, %v4945_v1  ;;  %v1837_v2 = vmul.f32 %v1774_v56, %v1408_v7  ;;  %v1838_v30 = vmul.f32 %v1774_v56, %v1457_v58  ;;  %v1839_v28 = vmul.f32 %v1774_v56, %v1506_v40  ;;  %v1409_v53 = vpop.f32.mrf.mxu2 }
 0x28d   : > { %v1828_v20 = vmul.f32 %v1766_v24, %v4936_v57  ;;  %v1829_v14 = vmul.f32 %v1766_v24, %v1403_v59  ;;  %v1830_v45 = vmul.f32 %v1766_v24, %v1452_v46  ;;  %v1831_v15 = vmul.f32 %v1766_v24, %v1501_v21  ;;  %v5341_v24 = vld [vmem:[#allocation38_spill] sm:$0xff] }
 0x28e   : > { %v1900_v31 = vadd.f32 %v1836_v61, %v1708_v62  ;;  %v1901_v6 = vadd.f32 %v1837_v2, %v1709_v48  ;;  %v1902_v11 = vadd.f32 %v1838_v30, %v1710_v39  ;;  %v1903_v35 = vadd.f32 %v1839_v28, %v1711_v50  ;;  %v5342_v30 = vld [vmem:[#allocation73_spill] sm:$0xff] }
 0x28f   : > { %v1892_v43 = vadd.f32 %v1828_v20, %v1700_v12  ;;  %v1893_v60 = vadd.f32 %v1829_v14, %v1701_v55  ;;  %v1894_v17 = vadd.f32 %v1830_v45, %v1702_v16  ;;  %v1895_v5 = vadd.f32 %v1831_v15, %v1703_v29  ;;  %v5343_v15 = vld [vmem:[#allocation56_spill] sm:$0xff] }
 0x290   : > { %v5044_v33 = vpack.c.bf16 %v1901_v6, %v1900_v31  ;;  %v5046_v1 = vpack.c.bf16 %v1903_v35, %v1902_v11  ;;  %v2128_v34 = vpack.c.b16 %v2084_v49, %v2080_v4  ;;  %v2129_v7 = vpack.c.b16 %v2085_v44, %v2081_v13  ;;  %v1458_v44 = vpop.f32.mrf.mxu3  ;;  %v5344_v6 = vld [vmem:[#allocation74_spill] sm:$0xff] }
 0x291   : > { %v1936_v57 = vpack.c.bf16 %v1893_v60, %v1892_v43  ;;  %v1937_v59 = vpack.c.bf16 %v1895_v5, %v1894_v17  ;;  %v2086_v46 = vunpack.c.l.b16 %v1935_v32  ;;  %v2087_v21 = vunpack.c.h.b16 %v1935_v32  ;;  %v5345_v60 = vld [vmem:[#allocation39_spill] sm:$0xff] }
 0x292   : > { %v1705_v58 = vmul.f32 %v4970_v18, %v4860_v26  ;;  %v1706_v40 = vmul.f32 %v4970_v18, %v4991_v37  ;;  %2620 = vst [vmem:[%s4747_s4 + $0xc0] sm:$0xff] %v5044_v33  ;;  %v1707_v4 = vmul.f32 %v4970_v18, %v4995_v51  ;;  %2396 = vmatmul.bf16.gmra.mxu2 %v2128_v34 }
 0x293   : > { %2621 = vst [vmem:[%s4747_s4 + $0xc8] sm:$0xff] %v5046_v1  ;;  %2445 = vmatmul.bf16.gmra.mxu3 %v2129_v7  ;;  %v2130_v13 = vpack.c.b16 %v2086_v46, %v2082_v54  ;;  %v2131_v3 = vpack.c.b16 %v2087_v21, %v2083_v10  ;;  %v1770_v26 = vpop.permute.xlu1 %1769  ;;  %v2088_v50 = vunpack.c.l.b16 %v1936_v57  ;;  %v2089_v49 = vunpack.c.h.b16 %v1936_v57 }
 0x294   : > { %2616 = vst [vmem:[%s4747_s4 + $0xa0] sm:$0xff] %v1936_v57  ;;  %v1832_v62 = vmul.f32 %v1770_v26, %v4941_v42  ;;  %v1833_v37 = vmul.f32 %v1770_v26, %v1405_v19  ;;  %v1834_v48 = vmul.f32 %v1770_v26, %v5018_v63  ;;  %v1835_v38 = vmul.f32 %v1770_v26, %v5027_v25  ;;  %v1507_v63 = vpop.f32.mrf.mxu0 }
 0x295   : > { %2617 = vst [vmem:[%s4747_s4 + $0xa8] sm:$0xff] %v1937_v59  ;;  %2494 = vmatmul.bf16.gmra.mxu0 %v2130_v13  ;;  %2543 = vmatmul.bf16.gmra.mxu1 %v2131_v3  ;;  %v2090_v29 = vunpack.c.l.b16 %v1937_v59  ;;  %v2091_v56 = vunpack.c.h.b16 %v1937_v59  ;;  %v897_v61 = vadd.f32 %v5341_v24, %v5298_v41  ;;  %v1459_v2 = vadd.f32 %v1458_v44, %v4597_v36  ;;  %v5346_v3 = vld [vmem:[#allocation43_spill] sm:$0xff] }
 0x296   : > { %v1896_v18 = vadd.f32 %v1832_v62, %v1704_v0  ;;  %v1897_v51 = vadd.f32 %v1833_v37, %v1705_v58  ;;  %v1898_v32 = vadd.f32 %v1834_v48, %v1706_v40  ;;  %v1899_v39 = vadd.f32 %v1835_v38, %v1707_v4  ;;  %v1412_v40 = vpop.f32.mrf.mxu2 }
 0x297   : > { %v946_v28 = vadd.f32 %v5342_v30, %v4626_v23  ;;  %v1508_v45 = vadd.f32 %v1507_v63, %v4600_v8  ;;  %v1361_v31 = vadd.f32 %v5343_v15, %v5305_v22  ;;  %v995_v11 = vadd.f32 %v5344_v6, %v4629_v27 }
 0x298   : > { %v1938_v54 = vpack.c.bf16 %v1897_v51, %v1896_v18  ;;  %v1939_v10 = vpack.c.bf16 %v1899_v39, %v1898_v32  ;;  %v1410_v35 = vadd.f32 %v1409_v53, %v4594_v47  ;;  %v1461_v9 = vpop.f32.mrf.mxu3  ;;  %v900_v26 = vadd.f32 %v5346_v3, %v5298_v41  ;;  %v5347_v51 = vld [vmem:[#allocation59_spill] sm:$0xff]  ;;  %v5355_v3 = vld [vmem:[#allocation46_spill] sm:$0xff] }
 0x299   : > { %v1413_v37 = vadd.f32 %v1412_v40, %v4594_v47  ;;  %v1462_v38 = vadd.f32 %v1461_v9, %v4597_v36  ;;  %v1364_v32 = vadd.f32 %v5347_v51, %v5305_v22  ;;  %v5348_v39 = vld [vmem:[#allocation75_spill] sm:$0xff]  ;;  %v2097_v63 = vunpack.c.h.b16 %v5044_v33 }
 0x29a   : > { %2618 = vst [vmem:[%s4747_s4 + $0xb0] sm:$0xff] %v1938_v54  ;;  %v2092_v52 = vunpack.c.l.b16 %v1938_v54  ;;  %v2093_v42 = vunpack.c.h.b16 %v1938_v54  ;;  %v2094_v55 = vunpack.c.l.b16 %v1939_v10  ;;  %v2095_v16 = vunpack.c.h.b16 %v1939_v10 }
 0x29b   : > { %2619 = vst [vmem:[%s4747_s4 + $0xb8] sm:$0xff] %v1939_v10  ;;  %v949_v54 = vadd.f32 %v5348_v39, %v4626_v23  ;;  %v5349_v10 = vld [vmem:[#allocation76_spill] sm:$0xff] }
 0x29c   : > { %v2132_v25 = vpack.c.b16 %v2092_v52, %v2088_v50  ;;  %v2133_v12 = vpack.c.b16 %v2093_v42, %v2089_v49  ;;  %v2134_v20 = vpack.c.b16 %v2094_v55, %v2090_v29  ;;  %v2135_v14 = vpack.c.b16 %v2095_v16, %v2091_v56  ;;  %v1510_v58 = vpop.f32.mrf.mxu0 }
 0x29d   : > { %v1511_v18 = vadd.f32 %v1510_v58, %v4600_v8  ;;  %v998_v50 = vadd.f32 %v5349_v10, %v4629_v27  ;;  %v2096_v42 = vunpack.c.l.b16 %v5044_v33 }
 0x2a2   : > { %v1648_v43 = vpop.permute.xlu1 %1647  ;;  %2401 = vmatmul.bf16.gmra.mxu2 %v2132_v25  ;;  %v5350_v25 = vld [vmem:[#allocation42_spill] sm:$0xff] }
 0x2a3   : > { %2450 = vmatmul.bf16.gmra.mxu3 %v2133_v12  ;;  %v1712_v17 = vmul.f32 %v1648_v43, %v5345_v60  ;;  %v1713_v5 = vmul.f32 %v1648_v43, %v897_v61  ;;  %v1714_v34 = vmul.f32 %v1648_v43, %v946_v28  ;;  %v1778_v7 = vpop.permute.xlu0 %1777  ;;  %v1715_v57 = vmul.f32 %v1648_v43, %v995_v11  ;;  %v1463_v11 = vpop.f32.mrf.mxu3 }
 0x2a4   : > { %v1840_v59 = vmul.f32 %v1778_v7, %v1361_v31  ;;  %v1841_v46 = vmul.f32 %v1778_v7, %v1410_v35  ;;  %v1842_v21 = vmul.f32 %v1778_v7, %v1459_v2  ;;  %v1843_v0 = vmul.f32 %v1778_v7, %v1508_v45  ;;  %v1512_v60 = vpop.f32.mrf.mxu0  ;;  %v1658_v7 = vpop.permute.xlu2 %1657 }
 0x2a5   : > { %2499 = vmatmul.bf16.gmra.mxu0 %v2134_v20  ;;  %2548 = vmatmul.bf16.gmra.mxu1 %v2135_v14  ;;  %v2098_v35 = vunpack.c.l.b16 %v5046_v1  ;;  %v2099_v43 = vunpack.c.h.b16 %v5046_v1  ;;  %v1513_v40 = vadd.f32 %v1512_v60, %v4600_v8  ;;  %v5353_v1 = vld [vmem:[#allocation62_spill] sm:$0xff] }
 0x2a6   : > { %v1904_v19 = vadd.f32 %v1840_v59, %v1712_v17  ;;  %v1905_v4 = vadd.f32 %v1841_v46, %v1713_v5  ;;  %v1906_v13 = vadd.f32 %v1842_v21, %v1714_v34  ;;  %v1907_v62 = vadd.f32 %v1843_v0, %v1715_v57  ;;  %v1414_v17 = vpop.f32.mrf.mxu2  ;;  %v5351_v21 = vld [vmem:[#allocation47_spill] sm:$0xff]  ;;  %v5352_v0 = vld [vmem:[#allocation77_spill] sm:$0xff] }
 0x2a7   : > { %v1464_v46 = vadd.f32 %v1463_v11, %v4597_v36  ;;  %v902_v9 = vadd.f32 %v5351_v21, %v5298_v41  ;;  %v951_v58 = vadd.f32 %v5352_v0, %v4626_v23 }
 0x2a8   : > { %v1942_v48 = vpack.c.bf16 %v1905_v4, %v1904_v19  ;;  %v1943_v52 = vpack.c.bf16 %v1907_v62, %v1906_v13  ;;  %v1366_v19 = vadd.f32 %v5353_v1, %v5305_v22  ;;  %v1415_v4 = vadd.f32 %v1414_v17, %v4594_v47  ;;  %v5354_v13 = vld [vmem:[#allocation78_spill] sm:$0xff] }
 0x2a9   : > { %v1000_v36 = vadd.f32 %v5354_v13, %v4629_v27  ;;  %v1721_v41 = vmul.f32 %v1658_v7, %v902_v9  ;;  %v1722_v62 = vmul.f32 %v1658_v7, %v951_v58 }
 0x2aa   : > { %2622 = vst [vmem:[%s4747_s4 + $0xd0] sm:$0xff] %v1942_v48  ;;  %v1653_v49 = vpop.permute.xlu1 %1652  ;;  %v2100_v44 = vunpack.c.l.b16 %v1942_v48  ;;  %v2101_v53 = vunpack.c.h.b16 %v1942_v48  ;;  %v2102_v14 = vunpack.c.l.b16 %v1943_v52  ;;  %v2103_v45 = vunpack.c.h.b16 %v1943_v52 }
 0x2ab   : > { %2623 = vst [vmem:[%s4747_s4 + $0xd8] sm:$0xff] %v1943_v52  ;;  %v1716_v12 = vmul.f32 %v1653_v49, %v5350_v25  ;;  %v1717_v55 = vmul.f32 %v1653_v49, %v900_v26  ;;  %v1718_v16 = vmul.f32 %v1653_v49, %v949_v54  ;;  %v1719_v29 = vmul.f32 %v1653_v49, %v998_v50  ;;  %v1782_v56 = vpop.permute.xlu0 %1781 }
 0x2ac   : > { %v1844_v24 = vmul.f32 %v1782_v56, %v1364_v32  ;;  %v1845_v61 = vmul.f32 %v1782_v56, %v1413_v37  ;;  %v1846_v2 = vmul.f32 %v1782_v56, %v1462_v38  ;;  %v1847_v30 = vmul.f32 %v1782_v56, %v1511_v18  ;;  %v5118_v56 = vld [vmem:[%s5201_s7] ss:$0 sm:$0xff] }
 0x2ad   : > { %v2136_v28 = vpack.c.b16 %v2100_v44, %v2096_v42  ;;  %v2137_v20 = vpack.c.b16 %v2101_v53, %v2097_v63  ;;  %v2138_v57 = vpack.c.b16 %v2102_v14, %v2098_v35  ;;  %v2139_v59 = vpack.c.b16 %v2103_v45, %v2099_v43 }
 0x2ae   : > { %v1908_v15 = vadd.f32 %v1844_v24, %v1716_v12  ;;  %v1909_v31 = vadd.f32 %v1845_v61, %v1717_v55  ;;  %v1910_v33 = vadd.f32 %v1846_v2, %v1718_v16  ;;  %v1911_v6 = vadd.f32 %v1847_v30, %v1719_v29 }
 0x2af   : > { %v1720_v26 = vmul.f32 %v1658_v7, %v5355_v3  ;;  %v1723_v48 = vmul.f32 %v1658_v7, %v1000_v36 }
 0x2b0   : > { %v1944_v5 = vpack.c.bf16 %v1909_v31, %v1908_v15  ;;  %v1945_v34 = vpack.c.bf16 %v1911_v6, %v1910_v33 }
 0x2b2   : > { %2624 = vst [vmem:[%s4747_s4 + $0xe0] sm:$0xff] %v1944_v5  ;;  %2406 = vmatmul.bf16.gmra.mxu2 %v2136_v28  ;;  %v2104_v54 = vunpack.c.l.b16 %v1944_v5  ;;  %v2105_v50 = vunpack.c.h.b16 %v1944_v5  ;;  %v2106_v53 = vunpack.c.l.b16 %v1945_v34  ;;  %v2107_v25 = vunpack.c.h.b16 %v1945_v34 }
 0x2b3   : > { %2625 = vst [vmem:[%s4747_s4 + $0xe8] sm:$0xff] %v1945_v34  ;;  %2455 = vmatmul.bf16.gmra.mxu3 %v2137_v20  ;;  %v1786_v23 = vpop.permute.xlu1 %1785 }
 0x2b4   : > { %v1848_v8 = vmul.f32 %v1786_v23, %v1366_v19  ;;  %v1849_v37 = vmul.f32 %v1786_v23, %v1415_v4  ;;  %v1850_v22 = vmul.f32 %v1786_v23, %v1464_v46  ;;  %v1851_v47 = vmul.f32 %v1786_v23, %v1513_v40 }
 0x2b5   : > { %2504 = vmatmul.bf16.gmra.mxu0 %v2138_v57  ;;  %2553 = vmatmul.bf16.gmra.mxu1 %v2139_v59 }
 0x2b6   : > { %v1912_v38 = vadd.f32 %v1848_v8, %v1720_v26  ;;  %v1913_v18 = vadd.f32 %v1849_v37, %v1721_v41  ;;  %v1914_v51 = vadd.f32 %v1850_v22, %v1722_v62  ;;  %v1915_v32 = vadd.f32 %v1851_v47, %v1723_v48 }
 0x2b8   : > { %v1946_v39 = vpack.c.bf16 %v1913_v18, %v1912_v38  ;;  %v1947_v27 = vpack.c.bf16 %v1915_v32, %v1914_v51 }
 0x2ba   : > { %2626 = vst [vmem:[%s4747_s4 + $0xf0] sm:$0xff] %v1946_v39  ;;  %v2108_v10 = vunpack.c.l.b16 %v1946_v39  ;;  %v2109_v52 = vunpack.c.h.b16 %v1946_v39  ;;  %v2110_v44 = vunpack.c.l.b16 %v1947_v27  ;;  %v2111_v63 = vunpack.c.h.b16 %v1947_v27 }
 0x2bb   : > { %2627 = vst [vmem:[%s4747_s4 + $0xf8] sm:$0xff] %v1947_v27 }
 0x2bc   : > { %v2140_v49 = vpack.c.b16 %v2108_v10, %v2104_v54  ;;  %v2141_v42 = vpack.c.b16 %v2109_v52, %v2105_v50  ;;  %v2142_v12 = vpack.c.b16 %v2110_v44, %v2106_v53  ;;  %v2143_v55 = vpack.c.b16 %v2111_v63, %v2107_v25 }
 0x2c2   : > { %2411 = vmatmul.bf16.gmra.mxu2 %v2140_v49 }
 0x2c3   : > { %2460 = vmatmul.bf16.gmra.mxu3 %v2141_v42 }
 0x2c5   : > { %2509 = vmatmul.bf16.gmra.mxu0 %v2142_v12  ;;  %2558 = vmatmul.bf16.gmra.mxu1 %v2143_v55 }
 0x2d0   : > { %v2475_v16 = vpop.f32.mrf.mxu0 }
 0x2d1   : > { %v2524_v29 = vpop.f32.mrf.mxu1 }
 0x2d5   : > { %v2377_v24 = vpop.f32.mrf.mxu2 }
 0x2d6   : > { %v2426_v61 = vpop.f32.mrf.mxu3  ;;  %v2378_v2 = vadd.f32 %v5118_v56, %v2377_v24 }
 0x2d8   : > { %v2477_v30 = vpop.f32.mrf.mxu0  ;;  %v2427_v20 = vadd.f32 %v2426_v61, %v2378_v2 }
 0x2d9   : > { %v2526_v28 = vpop.f32.mrf.mxu1 }
 0x2dd   : > { %v2379_v14 = vpop.f32.mrf.mxu2 }
 0x2de   : > { %v2428_v45 = vpop.f32.mrf.mxu3 }
 0x2df   : > { %3848 = shalt.err (!%p3845_p10)
}
 0x2e0   : > { %s3918_s11 = smov 256   ;;  %s3919_s4 = smov 16   ;;  %v2380_v15 = vadd.f32 %v5118_v56, %v2379_v14  ;;  %v2476_v31 = vadd.f32 %v2475_v16, %v2427_v20  ;;  %v2480_v6 = vpop.f32.mrf.mxu0 }
 0x2e1   : > { %3504 = dma.vmem_to_hbm [thread:$0]  (%p4060_p0), %s2652_s3, 4096, %s2654_s6, %s2634_s5, %s3918_s11, %s3918_s11, %s3919_s4   ;;  %v2529_v11 = vpop.f32.mrf.mxu1 }
 0x2e2   : > { %s5364_s13 = smov (!%p5124_p1, %s2845_s13), 31  ;;  %v2429_v33 = vadd.f32 %v2428_v45, %v2380_v15  ;;  %v2525_v43 = vadd.f32 %v2524_v29, %v2476_v31 }
 0x2e3   : > { %s2846_s19 = sshll.u32 %s5364_s13, 2 }
 0x2e4   : > { %v2478_v35 = vadd.f32 %v2477_v30, %v2429_v33  ;;  %s5152_s29 = scalar_lea.vmem %s5202_s8, %s2846_s19 }
 0x2e5   : > { %v2382_v17 = vpop.f32.mrf.mxu2 }
 0x2e6   : > { %v2527_v60 = vadd.f32 %v2526_v28, %v2478_v35  ;;  %v2431_v5 = vpop.f32.mrf.mxu3  ;;  %v2383_v7 = vadd.f32 %v5118_v56, %v2382_v17 }
 0x2e8   : > { %v3420_v34 = vpack.c.bf16 %v2527_v60, %v2525_v43  ;;  %v2482_v57 = vpop.f32.mrf.mxu0  ;;  %v2432_v46 = vadd.f32 %v2431_v5, %v2383_v7 }
 0x2e9   : > { %v2531_v59 = vpop.f32.mrf.mxu1 }
 0x2ea   : > { %3421 = vst [vmem:[%s5152_s29] sm:$0xff] %v3420_v34   ;;  %v2481_v58 = vadd.f32 %v2480_v6, %v2432_v46 }
 0x2ec   : > { %v2530_v13 = vadd.f32 %v2529_v11, %v2481_v58 }
 0x2ed   : > { %v2384_v21 = vpop.f32.mrf.mxu2 }
 0x2ee   : > { %v2433_v9 = vpop.f32.mrf.mxu3  ;;  %v2385_v0 = vadd.f32 %v5118_v56, %v2384_v21 }
 0x2f0   : > { %v2434_v40 = vadd.f32 %v2433_v9, %v2385_v0  ;;  %v2485_v1 = vpop.f32.mrf.mxu0 }
 0x2f1   : > { %v2534_v19 = vpop.f32.mrf.mxu1 }
 0x2f2   : > { %v2483_v4 = vadd.f32 %v2482_v57, %v2434_v40 }
 0x2f4   : > { %v2532_v36 = vadd.f32 %v2531_v59, %v2483_v4 }
 0x2f5   : > { %v2387_v26 = vpop.f32.mrf.mxu2 }
 0x2f6   : > { %v3425_v3 = vpack.c.bf16 %v2532_v36, %v2530_v13  ;;  %v2436_v41 = vpop.f32.mrf.mxu3  ;;  %v2388_v62 = vadd.f32 %v5118_v56, %v2387_v26 }
 0x2f8   : > { %3457 = vst [vmem:[%s5152_s29 + $0x8] sm:$0xff] %v3425_v3   ;;  %v2487_v23 = vpop.f32.mrf.mxu0  ;;  %v2437_v37 = vadd.f32 %v2436_v41, %v2388_v62 }
 0x2f9   : > { %v2536_v8 = vpop.f32.mrf.mxu1 }
 0x2fa   : > { %v2486_v38 = vadd.f32 %v2485_v1, %v2437_v37 }
 0x2fc   : > { %v2535_v27 = vadd.f32 %v2534_v19, %v2486_v38 }
 0x2fd   : > { %v2389_v22 = vpop.f32.mrf.mxu2 }
 0x2fe   : > { %v2438_v48 = vpop.f32.mrf.mxu3  ;;  %v2390_v47 = vadd.f32 %v5118_v56, %v2389_v22 }
 0x300   : > { %v2439_v18 = vadd.f32 %v2438_v48, %v2390_v47  ;;  %v2490_v51 = vpop.f32.mrf.mxu0 }
 0x301   : > { %v2539_v32 = vpop.f32.mrf.mxu1 }
 0x302   : > { %v2488_v39 = vadd.f32 %v2487_v23, %v2439_v18 }
 0x304   : > { %v2537_v54 = vadd.f32 %v2536_v8, %v2488_v39 }
 0x305   : > { %v2392_v10 = vpop.f32.mrf.mxu2 }
 0x306   : > { %v2441_v50 = vpop.f32.mrf.mxu3  ;;  %v3430_v52 = vpack.c.bf16 %v2537_v54, %v2535_v27  ;;  %v2393_v49 = vadd.f32 %v5118_v56, %v2392_v10 }
 0x308   : > { %3458 = vst [vmem:[%s5152_s29 + $0x10] sm:$0xff] %v3430_v52   ;;  %v2492_v42 = vpop.f32.mrf.mxu0  ;;  %v2442_v63 = vadd.f32 %v2441_v50, %v2393_v49 }
 0x309   : > { %v2541_v44 = vpop.f32.mrf.mxu1 }
 0x30a   : > { %v2491_v55 = vadd.f32 %v2490_v51, %v2442_v63 }
 0x30c   : > { %v2540_v2 = vadd.f32 %v2539_v32, %v2491_v55 }
 0x30d   : > { %v2394_v53 = vpop.f32.mrf.mxu2 }
 0x30e   : > { %v2443_v25 = vpop.f32.mrf.mxu3  ;;  %v2395_v12 = vadd.f32 %v5118_v56, %v2394_v53 }
 0x310   : > { %v2444_v16 = vadd.f32 %v2443_v25, %v2395_v12 }
 0x312   : > { %v2495_v29 = vpop.f32.mrf.mxu0  ;;  %v2544_v24 = vpop.f32.mrf.mxu1  ;;  %v2493_v61 = vadd.f32 %v2492_v42, %v2444_v16 }
 0x314   : > { %v2542_v30 = vadd.f32 %v2541_v44, %v2493_v61 }
 0x315   : > { %v2397_v28 = vpop.f32.mrf.mxu2 }
 0x316   : > { %v2446_v20 = vpop.f32.mrf.mxu3  ;;  %v3435_v14 = vpack.c.bf16 %v2542_v30, %v2540_v2  ;;  %v2398_v45 = vadd.f32 %v5118_v56, %v2397_v28 }
 0x318   : > { %3459 = vst [vmem:[%s5152_s29 + $0x18] sm:$0xff] %v3435_v14   ;;  %v2447_v33 = vadd.f32 %v2446_v20, %v2398_v45 }
 0x31a   : > { %v2497_v15 = vpop.f32.mrf.mxu0  ;;  %v2546_v31 = vpop.f32.mrf.mxu1  ;;  %v2496_v43 = vadd.f32 %v2495_v29, %v2447_v33 }
 0x31c   : > { %v2545_v7 = vadd.f32 %v2544_v24, %v2496_v43 }
 0x31d   : > { %v2399_v6 = vpop.f32.mrf.mxu2 }
 0x31e   : > { %v2448_v11 = vpop.f32.mrf.mxu3  ;;  %v2400_v35 = vadd.f32 %v5118_v56, %v2399_v6 }
 0x320   : > { %v2449_v60 = vadd.f32 %v2448_v11, %v2400_v35 }
 0x322   : > { %v2500_v17 = vpop.f32.mrf.mxu0  ;;  %v2549_v5 = vpop.f32.mrf.mxu1  ;;  %v2498_v34 = vadd.f32 %v2497_v15, %v2449_v60 }
 0x324   : > { %v2547_v57 = vadd.f32 %v2546_v31, %v2498_v34 }
 0x325   : > { %v2402_v59 = vpop.f32.mrf.mxu2 }
 0x326   : > { %v2451_v46 = vpop.f32.mrf.mxu3  ;;  %v3440_v21 = vpack.c.bf16 %v2547_v57, %v2545_v7  ;;  %v2403_v9 = vadd.f32 %v5118_v56, %v2402_v59 }
 0x328   : > { %3460 = vst [vmem:[%s5152_s29 + $0x20] sm:$0xff] %v3440_v21   ;;  %v2452_v40 = vadd.f32 %v2451_v46, %v2403_v9 }
 0x32a   : > { %v2502_v0 = vpop.f32.mrf.mxu0  ;;  %v2551_v58 = vpop.f32.mrf.mxu1  ;;  %v2501_v13 = vadd.f32 %v2500_v17, %v2452_v40 }
 0x32c   : > { %v2550_v41 = vadd.f32 %v2549_v5, %v2501_v13 }
 0x32d   : > { %v2404_v1 = vpop.f32.mrf.mxu2 }
 0x32e   : > { %v2453_v19 = vpop.f32.mrf.mxu3  ;;  %v2405_v4 = vadd.f32 %v5118_v56, %v2404_v1 }
 0x330   : > { %v2454_v36 = vadd.f32 %v2453_v19, %v2405_v4 }
 0x332   : > { %v2503_v3 = vadd.f32 %v2502_v0, %v2454_v36  ;;  %v2505_v26 = vpop.f32.mrf.mxu0  ;;  %v2554_v23 = vpop.f32.mrf.mxu1 }
 0x334   : > { %v2552_v62 = vadd.f32 %v2551_v58, %v2503_v3 }
 0x335   : > { %v2407_v8 = vpop.f32.mrf.mxu2 }
 0x336   : > { %v2456_v37 = vpop.f32.mrf.mxu3  ;;  %v3445_v22 = vpack.c.bf16 %v2552_v62, %v2550_v41  ;;  %v2408_v48 = vadd.f32 %v5118_v56, %v2407_v8 }
 0x338   : > { %3461 = vst [vmem:[%s5152_s29 + $0x28] sm:$0xff] %v3445_v22   ;;  %v2457_v47 = vadd.f32 %v2456_v37, %v2408_v48 }
 0x33a   : > { %v2507_v38 = vpop.f32.mrf.mxu0  ;;  %v2556_v39 = vpop.f32.mrf.mxu1  ;;  %v2506_v27 = vadd.f32 %v2505_v26, %v2457_v47 }
 0x33c   : > { %v2555_v50 = vadd.f32 %v2554_v23, %v2506_v27 }
 0x33d   : > { %v2409_v18 = vpop.f32.mrf.mxu2 }
 0x33e   : > { %v2458_v51 = vpop.f32.mrf.mxu3  ;;  %v2410_v32 = vadd.f32 %v5118_v56, %v2409_v18 }
 0x340   : > { %v2459_v54 = vadd.f32 %v2458_v51, %v2410_v32 }
 0x342   : > { %v2508_v10 = vadd.f32 %v2507_v38, %v2459_v54  ;;  %v2510_v63 = vpop.f32.mrf.mxu0  ;;  %v2559_v25 = vpop.f32.mrf.mxu1 }
 0x344   : > { %v2557_v52 = vadd.f32 %v2556_v39, %v2508_v10 }
 0x345   : > { %v2412_v49 = vpop.f32.mrf.mxu2 }
 0x346   : > { %v2461_v42 = vpop.f32.mrf.mxu3  ;;  %v3450_v44 = vpack.c.bf16 %v2557_v52, %v2555_v50  ;;  %v2413_v53 = vadd.f32 %v5118_v56, %v2412_v49 }
 0x348   : > { %3462 = vst [vmem:[%s5152_s29 + $0x30] sm:$0xff] %v3450_v44   ;;  %v2462_v12 = vadd.f32 %v2461_v42, %v2413_v53 }
 0x34a   : > { %v2511_v24 = vadd.f32 %v2510_v63, %v2462_v12  ;;  %v2512_v2 = vpop.f32.mrf.mxu0  ;;  %v2561_v28 = vpop.f32.mrf.mxu1 }
 0x34c   : > { %v2560_v20 = vadd.f32 %v2559_v25, %v2511_v24 }
 0x34d   : > { %v2414_v55 = vpop.f32.mrf.mxu2 }
 0x34e   : > { %v2415_v16 = vadd.f32 %v5118_v56, %v2414_v55  ;;  %v2463_v29 = vpop.f32.mrf.mxu3 }
 0x350   : > { %v2464_v61 = vadd.f32 %v2463_v29, %v2415_v16 }
 0x352   : > { %v2513_v30 = vadd.f32 %v2512_v2, %v2464_v61 }
 0x354   : > { %v2562_v14 = vadd.f32 %v2561_v28, %v2513_v30 }
 0x356   : > { %v3455_v45 = vpack.c.bf16 %v2562_v14, %v2560_v20 }
 0x358   : > { %3463 = vst [vmem:[%s5152_s29 + $0x38] sm:$0xff] %v3455_v45  }
 0x359 PF: > { %s2676_s16 = sand.u32 1, %s3891_s30   ;;  %p5357_p0 = scmp.ge.s32.totalorder %s3903_s12, 2 }
 0x35a   : > { %s2677_s20 = scalar_lea.sflag [#allocation4], %s2676_s16 }
 0x35b   : > { %p3530_p11 = pnand %p5357_p0, %p4066_p6 }
 0x35d   : > { %p3531_p12 = pneg %p3530_p11 }
 0x35f   : > { %3886 = dma.done.wait (%p3531_p12), %s2677_s20, 4096  }
 0x360   : > { %3888 = vsyncadd (%p3531_p12), %s2677_s20, 4294963200  ;;  %s5358_s13 = sld [smem:[#allocation21_spill]]  ;;  %p28_p2 = scmp.ge.s32.totalorder %s4036_s18, 4  }
 0x361   : > { %s5359_s11 = sld [smem:[#allocation22_spill]]  ;;  %s5360_s30 = smov %s3895_s10 }
 0x362   : > { %s5362_s12 = smov %s4036_s18  ;;  %30 = sbr.rel (!%p28_p2) target bundleno = 16 (0x10), region = 142 }
 0x366   : > { %s5361_s10 = smov %s5358_s13 }
 0x367   :  { %2683 = vsyncpa [#allocation3], 1 }
 0x368   :  { %2685 = vsyncpa [#allocation3 + $0x1], 1 }
 0x369   :  { %2686 = vsyncpa [#allocation6], 1 }
 0x36a   :  { %2688 = vsyncpa [#allocation6 + $0x1], 1 }
 0x36b   :  { %2689 = vsyncpa [#allocation9], 1 }
 0x36c   :  { %2690 = vsyncpa [#allocation12], 1 }
 0x36d   :  { %2691 = vsyncpa [#allocation4], 1 }
 0x36e   :  { %2693 = vsyncpa [#allocation4 + $0x1], 1 }

</bundles_post_ra>
